<compile_context>
chip_gen: v5e
topology: v5e:2x2
jax: 0.10.0
libtpu: 0.0.40
codegen_flags: <defaults>
</compile_context>

<pallas_src>
import functools
import math

import jax
import jax.numpy as jnp
import numpy as np
from jax.experimental import pallas as pl
from jax.experimental.pallas import tpu as pltpu

# ----------------------------- model constants ------------------------------
INPUT_DIM = 2          # (x, y) waypoints
EMB = 16               # input_embedding_size
HID = 32               # hidden_size (LSTM + GRUCell)
MLP_H = 32             # output_sizes[0]
MLP_O = 4              # output_sizes[1] = 2 (dloc) + 2 (scale)
LEAKY_SLOPE = 0.01     # F.leaky_relu default
SCALE_EPS = 1e-3


def _sigmoid(x):
    # tanh form: one EUP op instead of exp + divide
    return 0.5 * jnp.tanh(0.5 * x) + 0.5


def _softplus(x):
    return jnp.maximum(x, 0.0) + jnp.log(1.0 + jnp.exp(-jnp.abs(x)))


# --------------------------------- kernel -----------------------------------
def flownet_kernel(hist_ref, fut_ref, yprev_ref,
                   we_ref, be_ref,
                   lstm_wih_ref, lstm_whh_ref, lstm_b_ref,
                   gru_wih_ref, gru_whh_ref, gru_bih_ref, gru_bhn_ref,
                   w1_ref, b1_ref, w2_ref, b2_ref,
                   out_ref, *, bpad, t_hist, t_fut):
    f32 = jnp.float32
    B = bpad
    H = HID

    # ---------- hoisted weight / bias loads (loaded once, reused every step) --
    we = we_ref[...]
    be = be_ref[...]
    lstm_wih = lstm_wih_ref[...]
    lstm_whh = lstm_whh_ref[...]
    lstm_b = lstm_b_ref[...]
    gru_wih = gru_wih_ref[...]
    gru_whh = gru_whh_ref[...]
    gru_bih = gru_bih_ref[...]                                   # folded r/z b_hh
    gru_bhn_b = jnp.broadcast_to(gru_bhn_ref[...], (B, H))       # b_hn only (hoisted)
    w1 = w1_ref[...]
    b1 = b1_ref[...]
    w2 = w2_ref[...]
    b2 = b2_ref[...]

    hist = hist_ref[...].astype(f32)      # (t_hist*B, 2) time-major
    fut = fut_ref[...].astype(f32)        # (t_fut*B, 2)  time-major
    yprev = yprev_ref[...].astype(f32)    # (t_fut*B, 2)  time-major

    # ---------- batched, time-independent matmuls (off the serial chains) ----
    emb = jnp.dot(hist, we, preferred_element_type=f32) + be
    emb = jnp.where(emb >= 0.0, emb, LEAKY_SLOPE * emb)                  # leaky_relu
    x_ih = jnp.dot(emb, lstm_wih, preferred_element_type=f32) + lstm_b  # (t_hist*B, 4H)
    # gi_all already carries b_ih (r,z,n) + b_hh (r,z); b_hn handled in-loop.
    gi_all = jnp.dot(yprev, gru_wih, preferred_element_type=f32) + gru_bih  # (t_fut*B, 3H)

    # ---------- LSTM gate activation in ONE tanh over the full (B,4H) tile ---
    # sigmoid(x) = 0.5*tanh(0.5*x)+0.5 on i/f/o lanes, plain tanh on g lanes.
    lane4 = jax.lax.broadcasted_iota(jnp.int32, (B, 4 * H), 1)
    is_g = jnp.logical_and(lane4 >= 2 * H, lane4 < 3 * H)
    pre_m = jnp.where(is_g, 1.0, 0.5).astype(f32)
    post_m = pre_m
    post_a = jnp.where(is_g, 0.0, 0.5).astype(f32)

    # ---------------- history encoder: LSTM (gate order i, f, g, o) ----------
    # Full Python unroll is intentional: T <= 8 (see TODO for longer horizons).
    h = jnp.zeros((B, H), f32)
    c = jnp.zeros((B, H), f32)
    for t in range(t_hist):
        gates = (x_ih[t * B:(t + 1) * B, :]
                 + jnp.dot(h, lstm_whh, preferred_element_type=f32))     # (B, 4H)
        act = jnp.tanh(gates * pre_m) * post_m + post_a
        i_g = act[:, 0 * H:1 * H]
        f_g = act[:, 1 * H:2 * H]
        g_g = act[:, 2 * H:3 * H]
        o_g = act[:, 3 * H:4 * H]
        c = f_g * c + i_g * g_g
        h = o_g * jnp.tanh(c)
    z = h                                                                # z[0] of LSTM

    # ---------------- serial GRU recurrence only (gate order r, z, n) --------
    # Per-step critical path: ONE matmul + one sigmoid-tanh + one tanh + update.
    # The MLP head / flow math is hoisted below (it never feeds back into z).
    z_steps = []
    for t in range(t_fut):
        gi = gi_all[t * B:(t + 1) * B, :]
        gh = jnp.dot(z, gru_whh, preferred_element_type=f32)             # (B, 3H)
        ru = 0.5 * jnp.tanh(0.5 * (gi[:, 0:2 * H] + gh[:, 0:2 * H])) + 0.5
        r_g = ru[:, 0:H]
        u_g = ru[:, H:2 * H]
        n_g = jnp.tanh(gi[:, 2 * H:3 * H] + r_g * (gh[:, 2 * H:3 * H] + gru_bhn_b))
        z = (1.0 - u_g) * n_g + u_g * z                                   # GRU hidden
        z_steps.append(z)

    # ---------------- batched MLP head + flow math (off the serial chain) ----
    z_all = jnp.concatenate(z_steps, axis=0)                              # (t_fut*B, H)
    h1 = jnp.maximum(jnp.dot(z_all, w1, preferred_element_type=f32) + b1, 0.0)
    dls = jnp.dot(h1, w2, preferred_element_type=f32) + b2                # (t_fut*B, 4)
    dloc = dls[:, 0:2]
    scale = _softplus(dls[:, 2:4]) + SCALE_EPS
    x = (fut - (yprev + dloc)) / scale                 # exact divide (off-chain: free)
    row_sq = jnp.sum(x * x, axis=-1, keepdims=True)                       # (t_fut*B, 1)
    row_ls = jnp.sum(jnp.log(scale), axis=-1, keepdims=True)              # (t_fut*B, 1)

    sq = jnp.zeros((B, 1), f32)
    logabsdet = jnp.zeros((B, 1), f32)
    for t in range(t_fut):
        sq = sq + row_sq[t * B:(t + 1) * B, :]
        logabsdet = logabsdet + row_ls[t * B:(t + 1) * B, :]

    # base distribution: MVN(0, I) over flattened (t_fut * 2)-dim vector
    D = float(t_fut * INPUT_DIM)
    log_prob = -0.5 * sq - 0.5 * D * math.log(2.0 * math.pi)

    # single (B, 2) store: lane 0 = log_prob, lane 1 = logabsdet
    col = jax.lax.broadcasted_iota(jnp.int32, (B, 2), 1)
    out_ref[...] = jnp.where(col == 0,
                             jnp.broadcast_to(log_prob, (B, 2)),
                             jnp.broadcast_to(logabsdet, (B, 2)))


# -------------------------------- wrapper ------------------------------------
def flownet_forward(history, future, params):
    B, T_h, _ = history.shape
    T_f = future.shape[1]
    # Pad batch to a sublane multiple. Throughput lever: callers may stack many
    # trajectories per call (up to 128 MXU rows on v5e, 256 on v6e/v7x) -- the
    # serial chain length is unchanged so throughput scales ~linearly with B.
    Bp = max(8, ((B + 7) // 8) * 8)

    def pad_b(a):
        return jnp.pad(a, ((0, Bp - B), (0, 0), (0, 0)))

    hist_p = pad_b(history.astype(jnp.float32))
    fut_p = pad_b(future.astype(jnp.float32))
    yprev_p = jnp.concatenate([hist_p[:, -1:, :], fut_p[:, :-1, :]], axis=1)

    # time-major flatten: step t occupies the sublane-aligned rows [t*Bp, (t+1)*Bp)
    def tmajor(a, T):
        return jnp.transpose(a, (1, 0, 2)).reshape(T * Bp, INPUT_DIM)

    hist_flat = tmajor(hist_p, T_h)
    fut_flat = tmajor(fut_p, T_f)
    yprev_flat = tmajor(yprev_p, T_f)

    # Fold the r/z chunks of b_hh into b_ih (removes a (B,64) add per serial GRU
    # step); b_hn must stay inside r*(W_hn h + b_hn) per PyTorch GRUCell semantics.
    gru_bih_folded = params["gru_bih"] + jnp.concatenate(
        [params["gru_bhh"][:, :2 * HID],
         jnp.zeros((1, HID), jnp.float32)], axis=1)
    gru_bhn = params["gru_bhh"][:, 2 * HID:3 * HID]

    args = (hist_flat, fut_flat, yprev_flat,
            params["we"], params["be"],
            params["lstm_wih"], params["lstm_whh"], params["lstm_b"],
            params["gru_wih"], params["gru_whh"], gru_bih_folded, gru_bhn,
            params["w1"], params["b1"], params["w2"], params["b2"])

    kernel = functools.partial(flownet_kernel, bpad=Bp, t_hist=T_h, t_fut=T_f)
    vmem = lambda: pl.BlockSpec(memory_space=pltpu.MemorySpace.VMEM)
    # Single program, no grid: total footprint <100 KiB so whole-array VMEM is
    # correct on all generations; a parallel batch-split grid (v7x 2nd TC) only
    # pays off for >=16 useful batch rows.
    out = pl.pallas_call(
        kernel,
        out_shape=jax.ShapeDtypeStruct((Bp, 2), jnp.float32),
        in_specs=[vmem() for _ in range(len(args))],
        out_specs=vmem(),
    )(*args)
    return out[:B, 0], out[:B, 1]


# --------------------------- pure-JAX reference -------------------------------
def flownet_reference(history, future, params):
    B, T_h, _ = history.shape
    T_f = future.shape[1]
    H = HID

    h = jnp.zeros((B, H), jnp.float32)
    c = jnp.zeros((B, H), jnp.float32)
    for t in range(T_h):
        x_t = history[:, t, :]
        e = jnp.dot(x_t, params["we"]) + params["be"]
        e = jnp.where(e >= 0.0, e, LEAKY_SLOPE * e)
        gates = (jnp.dot(e, params["lstm_wih"])
                 + jnp.dot(h, params["lstm_whh"])
                 + params["lstm_b"])
        i_g = _sigmoid(gates[:, 0 * H:1 * H])
        f_g = _sigmoid(gates[:, 1 * H:2 * H])
        g_g = jnp.tanh(gates[:, 2 * H:3 * H])
        o_g = _sigmoid(gates[:, 3 * H:4 * H])
        c = f_g * c + i_g * g_g
        h = o_g * jnp.tanh(c)
    z = h

    y_tm1 = history[:, -1, :]
    logabsdet = jnp.zeros((B,), jnp.float32)
    sq = jnp.zeros((B,), jnp.float32)
    for t in range(T_f):
        y_t = future[:, t, :]
        gi = jnp.dot(y_tm1, params["gru_wih"]) + params["gru_bih"]
        gh = jnp.dot(z, params["gru_whh"]) + params["gru_bhh"]
        r_g = _sigmoid(gi[:, 0 * H:1 * H] + gh[:, 0 * H:1 * H])
        u_g = _sigmoid(gi[:, 1 * H:2 * H] + gh[:, 1 * H:2 * H])
        n_g = jnp.tanh(gi[:, 2 * H:3 * H] + r_g * gh[:, 2 * H:3 * H])
        z = (1.0 - u_g) * n_g + u_g * z
        h1 = jnp.maximum(jnp.dot(z, params["w1"]) + params["b1"], 0.0)
        dls = jnp.dot(h1, params["w2"]) + params["b2"]
        dloc = dls[:, 0:2]
        scale = _softplus(dls[:, 2:4]) + SCALE_EPS
        x_t = (y_t - (y_tm1 + dloc)) / scale
        logabsdet = logabsdet + jnp.sum(jnp.log(scale), axis=-1)
        sq = sq + jnp.sum(x_t * x_t, axis=-1)
        y_tm1 = y_t

    D = float(T_f * INPUT_DIM)
    log_prob = -0.5 * sq - 0.5 * D * math.log(2.0 * math.pi)
    return log_prob, logabsdet


# ------------------------------- param init -----------------------------------
def init_params(key):
    def u(k, shape, fan_in):
        bound = 1.0 / math.sqrt(fan_in)
        return jax.random.uniform(k, shape, jnp.float32, -bound, bound)

    ks = jax.random.split(key, 16)
    params = {
        # hist_embedding: Linear(2, 16)
        "we": u(ks[0], (INPUT_DIM, EMB), INPUT_DIM),
        "be": u(ks[1], (1, EMB), INPUT_DIM),
        # LSTM(16, 32): gate order i, f, g, o ; b = b_ih + b_hh folded together
        "lstm_wih": u(ks[2], (EMB, 4 * HID), HID),
        "lstm_whh": u(ks[3], (HID, 4 * HID), HID),
        "lstm_b": u(ks[4], (1, 4 * HID), HID),
        # GRUCell(2, 32): gate order r, z, n ; biases kept separate (r gates b_hn)
        "gru_wih": u(ks[5], (INPUT_DIM, 3 * HID), HID),
        "gru_whh": u(ks[6], (HID, 3 * HID), HID),
        "gru_bih": u(ks[7], (1, 3 * HID), HID),
        "gru_bhh": u(ks[8], (1, 3 * HID), HID),
        # MLP head: Linear(32,32) -> ReLU -> Linear(32,4)
        "w1": u(ks[9], (HID, MLP_H), HID),
        "b1": u(ks[10], (1, MLP_H), HID),
        "w2": u(ks[11], (MLP_H, MLP_O), MLP_H),
        "b2": u(ks[12], (1, MLP_O), MLP_H),
    }
    return params


# ---------------------------------- main ---------------------------------------
if __name__ == "__main__":
    B, T_HIST, FUTURE_LENS = 4, 8, 4

    key = jax.random.PRNGKey(0)
    k_params, k_hist, k_fut = jax.random.split(key, 3)
    params = init_params(k_params)
    history = jax.random.normal(k_hist, (B, T_HIST, INPUT_DIM), jnp.float32)
    future = jax.random.normal(k_fut, (B, FUTURE_LENS, INPUT_DIM), jnp.float32)

    log_prob, logabsdet = flownet_forward(history, future, params)
    jax.block_until_ready((log_prob, logabsdet))

    ref_lp, ref_lad = flownet_reference(history, future, params)
    # Tolerance sized for single-pass bf16 MXU matmuls (default precision)
    # propagated through a 12-step recurrence vs. the f32 reference.
    np.testing.assert_allclose(np.asarray(log_prob), np.asarray(ref_lp),
                               rtol=5e-2, atol=1e-1)
    np.testing.assert_allclose(np.asarray(logabsdet), np.asarray(ref_lad),
                               rtol=5e-2, atol=1e-1)
    assert log_prob.shape == (B,) and logabsdet.shape == (B,)
    assert np.all(np.isfinite(np.asarray(log_prob)))
    assert np.all(np.isfinite(np.asarray(logabsdet)))

    print("KERNEL_OK")
</pallas_src>

<mosaic_0001>
module attributes {stable_mosaic.version = 11 : i64} {
  func.func @flownet_kernel(%arg0: memref<64x2xf32, #tpu.memory_space<vmem>>, %arg1: memref<32x2xf32, #tpu.memory_space<vmem>>, %arg2: memref<32x2xf32, #tpu.memory_space<vmem>>, %arg3: memref<2x16xf32, #tpu.memory_space<vmem>>, %arg4: memref<1x16xf32, #tpu.memory_space<vmem>>, %arg5: memref<16x128xf32, #tpu.memory_space<vmem>>, %arg6: memref<32x128xf32, #tpu.memory_space<vmem>>, %arg7: memref<1x128xf32, #tpu.memory_space<vmem>>, %arg8: memref<2x96xf32, #tpu.memory_space<vmem>>, %arg9: memref<32x96xf32, #tpu.memory_space<vmem>>, %arg10: memref<1x96xf32, #tpu.memory_space<vmem>>, %arg11: memref<1x32xf32, #tpu.memory_space<vmem>>, %arg12: memref<32x32xf32, #tpu.memory_space<vmem>>, %arg13: memref<1x32xf32, #tpu.memory_space<vmem>>, %arg14: memref<32x4xf32, #tpu.memory_space<vmem>>, %arg15: memref<1x4xf32, #tpu.memory_space<vmem>>, %arg16: memref<8x2xf32, #tpu.memory_space<vmem>>) attributes {dimension_semantics = [], scalar_prefetch = 0 : i64, scratch_operands = 0 : i64, tpu.core_type = #tpu.core_type<tc>} {
    %c0 = arith.constant 0 : index
    %c0_0 = arith.constant 0 : index
    %0 = vector.load %arg3[%c0, %c0_0] : memref<2x16xf32, #tpu.memory_space<vmem>>, vector<2x16xf32>
    %c0_1 = arith.constant 0 : index
    %c0_2 = arith.constant 0 : index
    %1 = vector.load %arg4[%c0_1, %c0_2] : memref<1x16xf32, #tpu.memory_space<vmem>>, vector<1x16xf32>
    %c0_3 = arith.constant 0 : index
    %c0_4 = arith.constant 0 : index
    %2 = vector.load %arg5[%c0_3, %c0_4] : memref<16x128xf32, #tpu.memory_space<vmem>>, vector<16x128xf32>
    %c0_5 = arith.constant 0 : index
    %c0_6 = arith.constant 0 : index
    %3 = vector.load %arg6[%c0_5, %c0_6] : memref<32x128xf32, #tpu.memory_space<vmem>>, vector<32x128xf32>
    %c0_7 = arith.constant 0 : index
    %c0_8 = arith.constant 0 : index
    %4 = vector.load %arg7[%c0_7, %c0_8] : memref<1x128xf32, #tpu.memory_space<vmem>>, vector<1x128xf32>
    %c0_9 = arith.constant 0 : index
    %c0_10 = arith.constant 0 : index
    %5 = vector.load %arg8[%c0_9, %c0_10] : memref<2x96xf32, #tpu.memory_space<vmem>>, vector<2x96xf32>
    %c0_11 = arith.constant 0 : index
    %c0_12 = arith.constant 0 : index
    %6 = vector.load %arg9[%c0_11, %c0_12] : memref<32x96xf32, #tpu.memory_space<vmem>>, vector<32x96xf32>
    %c0_13 = arith.constant 0 : index
    %c0_14 = arith.constant 0 : index
    %7 = vector.load %arg10[%c0_13, %c0_14] : memref<1x96xf32, #tpu.memory_space<vmem>>, vector<1x96xf32>
    %c0_15 = arith.constant 0 : index
    %c0_16 = arith.constant 0 : index
    %8 = vector.load %arg11[%c0_15, %c0_16] : memref<1x32xf32, #tpu.memory_space<vmem>>, vector<1x32xf32>
    %9 = vector.shape_cast %8 : vector<1x32xf32> to vector<1x32xf32>
    %10 = vector.broadcast %9 : vector<1x32xf32> to vector<8x32xf32>
    %c0_17 = arith.constant 0 : index
    %c0_18 = arith.constant 0 : index
    %11 = vector.load %arg12[%c0_17, %c0_18] : memref<32x32xf32, #tpu.memory_space<vmem>>, vector<32x32xf32>
    %c0_19 = arith.constant 0 : index
    %c0_20 = arith.constant 0 : index
    %12 = vector.load %arg13[%c0_19, %c0_20] : memref<1x32xf32, #tpu.memory_space<vmem>>, vector<1x32xf32>
    %c0_21 = arith.constant 0 : index
    %c0_22 = arith.constant 0 : index
    %13 = vector.load %arg14[%c0_21, %c0_22] : memref<32x4xf32, #tpu.memory_space<vmem>>, vector<32x4xf32>
    %c0_23 = arith.constant 0 : index
    %c0_24 = arith.constant 0 : index
    %14 = vector.load %arg15[%c0_23, %c0_24] : memref<1x4xf32, #tpu.memory_space<vmem>>, vector<1x4xf32>
    %c0_25 = arith.constant 0 : index
    %c0_26 = arith.constant 0 : index
    %15 = vector.load %arg0[%c0_25, %c0_26] : memref<64x2xf32, #tpu.memory_space<vmem>>, vector<64x2xf32>
    %c0_27 = arith.constant 0 : index
    %c0_28 = arith.constant 0 : index
    %16 = vector.load %arg1[%c0_27, %c0_28] : memref<32x2xf32, #tpu.memory_space<vmem>>, vector<32x2xf32>
    %c0_29 = arith.constant 0 : index
    %c0_30 = arith.constant 0 : index
    %17 = vector.load %arg2[%c0_29, %c0_30] : memref<32x2xf32, #tpu.memory_space<vmem>>, vector<32x2xf32>
    %cst = arith.constant dense<0.000000e+00> : vector<64x16xf32>
    %18 = tpu.matmul %15, %0, %cst {dimension_numbers = #tpu.dot_dimension_numbers<[1], [0], [0], [1], [0, 0, 1, 1], [], []>} : vector<64x2xf32>, vector<2x16xf32>, vector<64x16xf32> -> vector<64x16xf32>
    %19 = vector.broadcast %1 : vector<1x16xf32> to vector<64x16xf32>
    %20 = arith.addf %18, %19 : vector<64x16xf32>
    %cst_31 = arith.constant 0.000000e+00 : f32
    %21 = vector.broadcast %cst_31 : f32 to vector<64x16xf32>
    %22 = arith.cmpf oge, %20, %21 : vector<64x16xf32>
    %cst_32 = arith.constant 0.00999999977 : f32
    %23 = vector.broadcast %cst_32 : f32 to vector<64x16xf32>
    %24 = arith.mulf %23, %20 : vector<64x16xf32>
    %25 = arith.select %22, %20, %24 : vector<64x16xi1>, vector<64x16xf32>
    %cst_33 = arith.constant dense<0.000000e+00> : vector<64x128xf32>
    %26 = tpu.matmul %25, %2, %cst_33 {dimension_numbers = #tpu.dot_dimension_numbers<[1], [0], [0], [1], [0, 0, 1, 1], [], []>} : vector<64x16xf32>, vector<16x128xf32>, vector<64x128xf32> -> vector<64x128xf32>
    %27 = vector.broadcast %4 : vector<1x128xf32> to vector<64x128xf32>
    %28 = arith.addf %26, %27 : vector<64x128xf32>
    %cst_34 = arith.constant dense<0.000000e+00> : vector<32x96xf32>
    %29 = tpu.matmul %17, %5, %cst_34 {dimension_numbers = #tpu.dot_dimension_numbers<[1], [0], [0], [1], [0, 0, 1, 1], [], []>} : vector<32x2xf32>, vector<2x96xf32>, vector<32x96xf32> -> vector<32x96xf32>
    %30 = vector.broadcast %7 : vector<1x96xf32> to vector<32x96xf32>
    %31 = arith.addf %29, %30 : vector<32x96xf32>
    %32 = tpu.iota {dimensions = array<i32: 1>} : vector<8x128xi32>
    %c64_i32 = arith.constant 64 : i32
    %33 = vector.broadcast %c64_i32 : i32 to vector<8x128xi32>
    %34 = arith.cmpi sge, %32, %33 : vector<8x128xi32>
    %c96_i32 = arith.constant 96 : i32
    %35 = vector.broadcast %c96_i32 : i32 to vector<8x128xi32>
    %36 = arith.cmpi slt, %32, %35 : vector<8x128xi32>
    %37 = arith.andi %34, %36 : vector<8x128xi1>
    %cst_35 = arith.constant 1.000000e+00 : f32
    %cst_36 = arith.constant 5.000000e-01 : f32
    %38 = vector.broadcast %cst_35 : f32 to vector<8x128xf32>
    %39 = vector.broadcast %cst_36 : f32 to vector<8x128xf32>
    %40 = arith.select %37, %38, %39 : vector<8x128xi1>, vector<8x128xf32>
    %cst_37 = arith.constant 0.000000e+00 : f32
    %cst_38 = arith.constant 5.000000e-01 : f32
    %41 = vector.broadcast %cst_37 : f32 to vector<8x128xf32>
    %42 = vector.broadcast %cst_38 : f32 to vector<8x128xf32>
    %43 = arith.select %37, %41, %42 : vector<8x128xi1>, vector<8x128xf32>
    %cst_39 = arith.constant 0.000000e+00 : f32
    %44 = vector.broadcast %cst_39 : f32 to vector<8x32xf32>
    %cst_40 = arith.constant 0.000000e+00 : f32
    %45 = vector.broadcast %cst_40 : f32 to vector<8x32xf32>
    %46 = vector.extract_strided_slice %28 {offsets = [0, 0], sizes = [8, 128], strides = [1, 1]} : vector<64x128xf32> to vector<8x128xf32>
    %cst_41 = arith.constant dense<0.000000e+00> : vector<8x128xf32>
    %47 = tpu.matmul %44, %3, %cst_41 {dimension_numbers = #tpu.dot_dimension_numbers<[1], [0], [0], [1], [0, 0, 1, 1], [], []>} : vector<8x32xf32>, vector<32x128xf32>, vector<8x128xf32> -> vector<8x128xf32>
    %48 = arith.addf %46, %47 : vector<8x128xf32>
    %49 = arith.mulf %48, %40 : vector<8x128xf32>
    %50 = math.tanh %49 : vector<8x128xf32>
    %51 = arith.mulf %50, %40 : vector<8x128xf32>
    %52 = arith.addf %51, %43 : vector<8x128xf32>
    %53 = vector.extract_strided_slice %52 {offsets = [0, 0], sizes = [8, 32], strides = [1, 1]} : vector<8x128xf32> to vector<8x32xf32>
    %54 = vector.extract_strided_slice %52 {offsets = [0, 32], sizes = [8, 32], strides = [1, 1]} : vector<8x128xf32> to vector<8x32xf32>
    %55 = vector.extract_strided_slice %52 {offsets = [0, 64], sizes = [8, 32], strides = [1, 1]} : vector<8x128xf32> to vector<8x32xf32>
    %56 = vector.extract_strided_slice %52 {offsets = [0, 96], sizes = [8, 32], strides = [1, 1]} : vector<8x128xf32> to vector<8x32xf32>
    %57 = arith.mulf %54, %45 : vector<8x32xf32>
    %58 = arith.mulf %53, %55 : vector<8x32xf32>
    %59 = arith.addf %57, %58 : vector<8x32xf32>
    %60 = math.tanh %59 : vector<8x32xf32>
    %61 = arith.mulf %56, %60 : vector<8x32xf32>
    %62 = vector.extract_strided_slice %28 {offsets = [8, 0], sizes = [8, 128], strides = [1, 1]} : vector<64x128xf32> to vector<8x128xf32>
    %cst_42 = arith.constant dense<0.000000e+00> : vector<8x128xf32>
    %63 = tpu.matmul %61, %3, %cst_42 {dimension_numbers = #tpu.dot_dimension_numbers<[1], [0], [0], [1], [0, 0, 1, 1], [], []>} : vector<8x32xf32>, vector<32x128xf32>, vector<8x128xf32> -> vector<8x128xf32>
    %64 = arith.addf %62, %63 : vector<8x128xf32>
    %65 = arith.mulf %64, %40 : vector<8x128xf32>
    %66 = math.tanh %65 : vector<8x128xf32>
    %67 = arith.mulf %66, %40 : vector<8x128xf32>
    %68 = arith.addf %67, %43 : vector<8x128xf32>
    %69 = vector.extract_strided_slice %68 {offsets = [0, 0], sizes = [8, 32], strides = [1, 1]} : vector<8x128xf32> to vector<8x32xf32>
    %70 = vector.extract_strided_slice %68 {offsets = [0, 32], sizes = [8, 32], strides = [1, 1]} : vector<8x128xf32> to vector<8x32xf32>
    %71 = vector.extract_strided_slice %68 {offsets = [0, 64], sizes = [8, 32], strides = [1, 1]} : vector<8x128xf32> to vector<8x32xf32>
    %72 = vector.extract_strided_slice %68 {offsets = [0, 96], sizes = [8, 32], strides = [1, 1]} : vector<8x128xf32> to vector<8x32xf32>
    %73 = arith.mulf %70, %59 : vector<8x32xf32>
    %74 = arith.mulf %69, %71 : vector<8x32xf32>
    %75 = arith.addf %73, %74 : vector<8x32xf32>
    %76 = math.tanh %75 : vector<8x32xf32>
    %77 = arith.mulf %72, %76 : vector<8x32xf32>
    %78 = vector.extract_strided_slice %28 {offsets = [16, 0], sizes = [8, 128], strides = [1, 1]} : vector<64x128xf32> to vector<8x128xf32>
    %cst_43 = arith.constant dense<0.000000e+00> : vector<8x128xf32>
    %79 = tpu.matmul %77, %3, %cst_43 {dimension_numbers = #tpu.dot_dimension_numbers<[1], [0], [0], [1], [0, 0, 1, 1], [], []>} : vector<8x32xf32>, vector<32x128xf32>, vector<8x128xf32> -> vector<8x128xf32>
    %80 = arith.addf %78, %79 : vector<8x128xf32>
    %81 = arith.mulf %80, %40 : vector<8x128xf32>
    %82 = math.tanh %81 : vector<8x128xf32>
    %83 = arith.mulf %82, %40 : vector<8x128xf32>
    %84 = arith.addf %83, %43 : vector<8x128xf32>
    %85 = vector.extract_strided_slice %84 {offsets = [0, 0], sizes = [8, 32], strides = [1, 1]} : vector<8x128xf32> to vector<8x32xf32>
    %86 = vector.extract_strided_slice %84 {offsets = [0, 32], sizes = [8, 32], strides = [1, 1]} : vector<8x128xf32> to vector<8x32xf32>
    %87 = vector.extract_strided_slice %84 {offsets = [0, 64], sizes = [8, 32], strides = [1, 1]} : vector<8x128xf32> to vector<8x32xf32>
    %88 = vector.extract_strided_slice %84 {offsets = [0, 96], sizes = [8, 32], strides = [1, 1]} : vector<8x128xf32> to vector<8x32xf32>
    %89 = arith.mulf %86, %75 : vector<8x32xf32>
    %90 = arith.mulf %85, %87 : vector<8x32xf32>
    %91 = arith.addf %89, %90 : vector<8x32xf32>
    %92 = math.tanh %91 : vector<8x32xf32>
    %93 = arith.mulf %88, %92 : vector<8x32xf32>
    %94 = vector.extract_strided_slice %28 {offsets = [24, 0], sizes = [8, 128], strides = [1, 1]} : vector<64x128xf32> to vector<8x128xf32>
    %cst_44 = arith.constant dense<0.000000e+00> : vector<8x128xf32>
    %95 = tpu.matmul %93, %3, %cst_44 {dimension_numbers = #tpu.dot_dimension_numbers<[1], [0], [0], [1], [0, 0, 1, 1], [], []>} : vector<8x32xf32>, vector<32x128xf32>, vector<8x128xf32> -> vector<8x128xf32>
    %96 = arith.addf %94, %95 : vector<8x128xf32>
    %97 = arith.mulf %96, %40 : vector<8x128xf32>
    %98 = math.tanh %97 : vector<8x128xf32>
    %99 = arith.mulf %98, %40 : vector<8x128xf32>
    %100 = arith.addf %99, %43 : vector<8x128xf32>
    %101 = vector.extract_strided_slice %100 {offsets = [0, 0], sizes = [8, 32], strides = [1, 1]} : vector<8x128xf32> to vector<8x32xf32>
    %102 = vector.extract_strided_slice %100 {offsets = [0, 32], sizes = [8, 32], strides = [1, 1]} : vector<8x128xf32> to vector<8x32xf32>
    %103 = vector.extract_strided_slice %100 {offsets = [0, 64], sizes = [8, 32], strides = [1, 1]} : vector<8x128xf32> to vector<8x32xf32>
    %104 = vector.extract_strided_slice %100 {offsets = [0, 96], sizes = [8, 32], strides = [1, 1]} : vector<8x128xf32> to vector<8x32xf32>
    %105 = arith.mulf %102, %91 : vector<8x32xf32>
    %106 = arith.mulf %101, %103 : vector<8x32xf32>
    %107 = arith.addf %105, %106 : vector<8x32xf32>
    %108 = math.tanh %107 : vector<8x32xf32>
    %109 = arith.mulf %104, %108 : vector<8x32xf32>
    %110 = vector.extract_strided_slice %28 {offsets = [32, 0], sizes = [8, 128], strides = [1, 1]} : vector<64x128xf32> to vector<8x128xf32>
    %cst_45 = arith.constant dense<0.000000e+00> : vector<8x128xf32>
    %111 = tpu.matmul %109, %3, %cst_45 {dimension_numbers = #tpu.dot_dimension_numbers<[1], [0], [0], [1], [0, 0, 1, 1], [], []>} : vector<8x32xf32>, vector<32x128xf32>, vector<8x128xf32> -> vector<8x128xf32>
    %112 = arith.addf %110, %111 : vector<8x128xf32>
    %113 = arith.mulf %112, %40 : vector<8x128xf32>
    %114 = math.tanh %113 : vector<8x128xf32>
    %115 = arith.mulf %114, %40 : vector<8x128xf32>
    %116 = arith.addf %115, %43 : vector<8x128xf32>
    %117 = vector.extract_strided_slice %116 {offsets = [0, 0], sizes = [8, 32], strides = [1, 1]} : vector<8x128xf32> to vector<8x32xf32>
    %118 = vector.extract_strided_slice %116 {offsets = [0, 32], sizes = [8, 32], strides = [1, 1]} : vector<8x128xf32> to vector<8x32xf32>
    %119 = vector.extract_strided_slice %116 {offsets = [0, 64], sizes = [8, 32], strides = [1, 1]} : vector<8x128xf32> to vector<8x32xf32>
    %120 = vector.extract_strided_slice %116 {offsets = [0, 96], sizes = [8, 32], strides = [1, 1]} : vector<8x128xf32> to vector<8x32xf32>
    %121 = arith.mulf %118, %107 : vector<8x32xf32>
    %122 = arith.mulf %117, %119 : vector<8x32xf32>
    %123 = arith.addf %121, %122 : vector<8x32xf32>
    %124 = math.tanh %123 : vector<8x32xf32>
    %125 = arith.mulf %120, %124 : vector<8x32xf32>
    %126 = vector.extract_strided_slice %28 {offsets = [40, 0], sizes = [8, 128], strides = [1, 1]} : vector<64x128xf32> to vector<8x128xf32>
    %cst_46 = arith.constant dense<0.000000e+00> : vector<8x128xf32>
    %127 = tpu.matmul %125, %3, %cst_46 {dimension_numbers = #tpu.dot_dimension_numbers<[1], [0], [0], [1], [0, 0, 1, 1], [], []>} : vector<8x32xf32>, vector<32x128xf32>, vector<8x128xf32> -> vector<8x128xf32>
    %128 = arith.addf %126, %127 : vector<8x128xf32>
    %129 = arith.mulf %128, %40 : vector<8x128xf32>
    %130 = math.tanh %129 : vector<8x128xf32>
    %131 = arith.mulf %130, %40 : vector<8x128xf32>
    %132 = arith.addf %131, %43 : vector<8x128xf32>
    %133 = vector.extract_strided_slice %132 {offsets = [0, 0], sizes = [8, 32], strides = [1, 1]} : vector<8x128xf32> to vector<8x32xf32>
    %134 = vector.extract_strided_slice %132 {offsets = [0, 32], sizes = [8, 32], strides = [1, 1]} : vector<8x128xf32> to vector<8x32xf32>
    %135 = vector.extract_strided_slice %132 {offsets = [0, 64], sizes = [8, 32], strides = [1, 1]} : vector<8x128xf32> to vector<8x32xf32>
    %136 = vector.extract_strided_slice %132 {offsets = [0, 96], sizes = [8, 32], strides = [1, 1]} : vector<8x128xf32> to vector<8x32xf32>
    %137 = arith.mulf %134, %123 : vector<8x32xf32>
    %138 = arith.mulf %133, %135 : vector<8x32xf32>
    %139 = arith.addf %137, %138 : vector<8x32xf32>
    %140 = math.tanh %139 : vector<8x32xf32>
    %141 = arith.mulf %136, %140 : vector<8x32xf32>
    %142 = vector.extract_strided_slice %28 {offsets = [48, 0], sizes = [8, 128], strides = [1, 1]} : vector<64x128xf32> to vector<8x128xf32>
    %cst_47 = arith.constant dense<0.000000e+00> : vector<8x128xf32>
    %143 = tpu.matmul %141, %3, %cst_47 {dimension_numbers = #tpu.dot_dimension_numbers<[1], [0], [0], [1], [0, 0, 1, 1], [], []>} : vector<8x32xf32>, vector<32x128xf32>, vector<8x128xf32> -> vector<8x128xf32>
    %144 = arith.addf %142, %143 : vector<8x128xf32>
    %145 = arith.mulf %144, %40 : vector<8x128xf32>
    %146 = math.tanh %145 : vector<8x128xf32>
    %147 = arith.mulf %146, %40 : vector<8x128xf32>
    %148 = arith.addf %147, %43 : vector<8x128xf32>
    %149 = vector.extract_strided_slice %148 {offsets = [0, 0], sizes = [8, 32], strides = [1, 1]} : vector<8x128xf32> to vector<8x32xf32>
    %150 = vector.extract_strided_slice %148 {offsets = [0, 32], sizes = [8, 32], strides = [1, 1]} : vector<8x128xf32> to vector<8x32xf32>
    %151 = vector.extract_strided_slice %148 {offsets = [0, 64], sizes = [8, 32], strides = [1, 1]} : vector<8x128xf32> to vector<8x32xf32>
    %152 = vector.extract_strided_slice %148 {offsets = [0, 96], sizes = [8, 32], strides = [1, 1]} : vector<8x128xf32> to vector<8x32xf32>
    %153 = arith.mulf %150, %139 : vector<8x32xf32>
    %154 = arith.mulf %149, %151 : vector<8x32xf32>
    %155 = arith.addf %153, %154 : vector<8x32xf32>
    %156 = math.tanh %155 : vector<8x32xf32>
    %157 = arith.mulf %152, %156 : vector<8x32xf32>
    %158 = vector.extract_strided_slice %28 {offsets = [56, 0], sizes = [8, 128], strides = [1, 1]} : vector<64x128xf32> to vector<8x128xf32>
    %cst_48 = arith.constant dense<0.000000e+00> : vector<8x128xf32>
    %159 = tpu.matmul %157, %3, %cst_48 {dimension_numbers = #tpu.dot_dimension_numbers<[1], [0], [0], [1], [0, 0, 1, 1], [], []>} : vector<8x32xf32>, vector<32x128xf32>, vector<8x128xf32> -> vector<8x128xf32>
    %160 = arith.addf %158, %159 : vector<8x128xf32>
    %161 = arith.mulf %160, %40 : vector<8x128xf32>
    %162 = math.tanh %161 : vector<8x128xf32>
    %163 = arith.mulf %162, %40 : vector<8x128xf32>
    %164 = arith.addf %163, %43 : vector<8x128xf32>
    %165 = vector.extract_strided_slice %164 {offsets = [0, 0], sizes = [8, 32], strides = [1, 1]} : vector<8x128xf32> to vector<8x32xf32>
    %166 = vector.extract_strided_slice %164 {offsets = [0, 32], sizes = [8, 32], strides = [1, 1]} : vector<8x128xf32> to vector<8x32xf32>
    %167 = vector.extract_strided_slice %164 {offsets = [0, 64], sizes = [8, 32], strides = [1, 1]} : vector<8x128xf32> to vector<8x32xf32>
    %168 = vector.extract_strided_slice %164 {offsets = [0, 96], sizes = [8, 32], strides = [1, 1]} : vector<8x128xf32> to vector<8x32xf32>
    %169 = arith.mulf %166, %155 : vector<8x32xf32>
    %170 = arith.mulf %165, %167 : vector<8x32xf32>
    %171 = arith.addf %169, %170 : vector<8x32xf32>
    %172 = math.tanh %171 : vector<8x32xf32>
    %173 = arith.mulf %168, %172 : vector<8x32xf32>
    %174 = vector.extract_strided_slice %31 {offsets = [0, 0], sizes = [8, 96], strides = [1, 1]} : vector<32x96xf32> to vector<8x96xf32>
    %cst_49 = arith.constant dense<0.000000e+00> : vector<8x96xf32>
    %175 = tpu.matmul %173, %6, %cst_49 {dimension_numbers = #tpu.dot_dimension_numbers<[1], [0], [0], [1], [0, 0, 1, 1], [], []>} : vector<8x32xf32>, vector<32x96xf32>, vector<8x96xf32> -> vector<8x96xf32>
    %176 = vector.extract_strided_slice %174 {offsets = [0, 0], sizes = [8, 64], strides = [1, 1]} : vector<8x96xf32> to vector<8x64xf32>
    %177 = vector.extract_strided_slice %175 {offsets = [0, 0], sizes = [8, 64], strides = [1, 1]} : vector<8x96xf32> to vector<8x64xf32>
    %178 = arith.addf %176, %177 : vector<8x64xf32>
    %cst_50 = arith.constant 5.000000e-01 : f32
    %179 = vector.broadcast %cst_50 : f32 to vector<8x64xf32>
    %180 = arith.mulf %179, %178 : vector<8x64xf32>
    %181 = math.tanh %180 : vector<8x64xf32>
    %cst_51 = arith.constant 5.000000e-01 : f32
    %182 = vector.broadcast %cst_51 : f32 to vector<8x64xf32>
    %183 = arith.mulf %182, %181 : vector<8x64xf32>
    %cst_52 = arith.constant 5.000000e-01 : f32
    %184 = vector.broadcast %cst_52 : f32 to vector<8x64xf32>
    %185 = arith.addf %183, %184 : vector<8x64xf32>
    %186 = vector.extract_strided_slice %185 {offsets = [0, 0], sizes = [8, 32], strides = [1, 1]} : vector<8x64xf32> to vector<8x32xf32>
    %187 = vector.extract_strided_slice %185 {offsets = [0, 32], sizes = [8, 32], strides = [1, 1]} : vector<8x64xf32> to vector<8x32xf32>
    %188 = vector.extract_strided_slice %174 {offsets = [0, 64], sizes = [8, 32], strides = [1, 1]} : vector<8x96xf32> to vector<8x32xf32>
    %189 = vector.extract_strided_slice %175 {offsets = [0, 64], sizes = [8, 32], strides = [1, 1]} : vector<8x96xf32> to vector<8x32xf32>
    %190 = arith.addf %189, %10 : vector<8x32xf32>
    %191 = arith.mulf %186, %190 : vector<8x32xf32>
    %192 = arith.addf %188, %191 : vector<8x32xf32>
    %193 = math.tanh %192 : vector<8x32xf32>
    %cst_53 = arith.constant 1.000000e+00 : f32
    %194 = vector.broadcast %cst_53 : f32 to vector<8x32xf32>
    %195 = arith.subf %194, %187 : vector<8x32xf32>
    %196 = arith.mulf %195, %193 : vector<8x32xf32>
    %197 = arith.mulf %187, %173 : vector<8x32xf32>
    %198 = arith.addf %196, %197 : vector<8x32xf32>
    %199 = vector.extract_strided_slice %31 {offsets = [8, 0], sizes = [8, 96], strides = [1, 1]} : vector<32x96xf32> to vector<8x96xf32>
    %cst_54 = arith.constant dense<0.000000e+00> : vector<8x96xf32>
    %200 = tpu.matmul %198, %6, %cst_54 {dimension_numbers = #tpu.dot_dimension_numbers<[1], [0], [0], [1], [0, 0, 1, 1], [], []>} : vector<8x32xf32>, vector<32x96xf32>, vector<8x96xf32> -> vector<8x96xf32>
    %201 = vector.extract_strided_slice %199 {offsets = [0, 0], sizes = [8, 64], strides = [1, 1]} : vector<8x96xf32> to vector<8x64xf32>
    %202 = vector.extract_strided_slice %200 {offsets = [0, 0], sizes = [8, 64], strides = [1, 1]} : vector<8x96xf32> to vector<8x64xf32>
    %203 = arith.addf %201, %202 : vector<8x64xf32>
    %cst_55 = arith.constant 5.000000e-01 : f32
    %204 = vector.broadcast %cst_55 : f32 to vector<8x64xf32>
    %205 = arith.mulf %204, %203 : vector<8x64xf32>
    %206 = math.tanh %205 : vector<8x64xf32>
    %cst_56 = arith.constant 5.000000e-01 : f32
    %207 = vector.broadcast %cst_56 : f32 to vector<8x64xf32>
    %208 = arith.mulf %207, %206 : vector<8x64xf32>
    %cst_57 = arith.constant 5.000000e-01 : f32
    %209 = vector.broadcast %cst_57 : f32 to vector<8x64xf32>
    %210 = arith.addf %208, %209 : vector<8x64xf32>
    %211 = vector.extract_strided_slice %210 {offsets = [0, 0], sizes = [8, 32], strides = [1, 1]} : vector<8x64xf32> to vector<8x32xf32>
    %212 = vector.extract_strided_slice %210 {offsets = [0, 32], sizes = [8, 32], strides = [1, 1]} : vector<8x64xf32> to vector<8x32xf32>
    %213 = vector.extract_strided_slice %199 {offsets = [0, 64], sizes = [8, 32], strides = [1, 1]} : vector<8x96xf32> to vector<8x32xf32>
    %214 = vector.extract_strided_slice %200 {offsets = [0, 64], sizes = [8, 32], strides = [1, 1]} : vector<8x96xf32> to vector<8x32xf32>
    %215 = arith.addf %214, %10 : vector<8x32xf32>
    %216 = arith.mulf %211, %215 : vector<8x32xf32>
    %217 = arith.addf %213, %216 : vector<8x32xf32>
    %218 = math.tanh %217 : vector<8x32xf32>
    %cst_58 = arith.constant 1.000000e+00 : f32
    %219 = vector.broadcast %cst_58 : f32 to vector<8x32xf32>
    %220 = arith.subf %219, %212 : vector<8x32xf32>
    %221 = arith.mulf %220, %218 : vector<8x32xf32>
    %222 = arith.mulf %212, %198 : vector<8x32xf32>
    %223 = arith.addf %221, %222 : vector<8x32xf32>
    %224 = vector.extract_strided_slice %31 {offsets = [16, 0], sizes = [8, 96], strides = [1, 1]} : vector<32x96xf32> to vector<8x96xf32>
    %cst_59 = arith.constant dense<0.000000e+00> : vector<8x96xf32>
    %225 = tpu.matmul %223, %6, %cst_59 {dimension_numbers = #tpu.dot_dimension_numbers<[1], [0], [0], [1], [0, 0, 1, 1], [], []>} : vector<8x32xf32>, vector<32x96xf32>, vector<8x96xf32> -> vector<8x96xf32>
    %226 = vector.extract_strided_slice %224 {offsets = [0, 0], sizes = [8, 64], strides = [1, 1]} : vector<8x96xf32> to vector<8x64xf32>
    %227 = vector.extract_strided_slice %225 {offsets = [0, 0], sizes = [8, 64], strides = [1, 1]} : vector<8x96xf32> to vector<8x64xf32>
    %228 = arith.addf %226, %227 : vector<8x64xf32>
    %cst_60 = arith.constant 5.000000e-01 : f32
    %229 = vector.broadcast %cst_60 : f32 to vector<8x64xf32>
    %230 = arith.mulf %229, %228 : vector<8x64xf32>
    %231 = math.tanh %230 : vector<8x64xf32>
    %cst_61 = arith.constant 5.000000e-01 : f32
    %232 = vector.broadcast %cst_61 : f32 to vector<8x64xf32>
    %233 = arith.mulf %232, %231 : vector<8x64xf32>
    %cst_62 = arith.constant 5.000000e-01 : f32
    %234 = vector.broadcast %cst_62 : f32 to vector<8x64xf32>
    %235 = arith.addf %233, %234 : vector<8x64xf32>
    %236 = vector.extract_strided_slice %235 {offsets = [0, 0], sizes = [8, 32], strides = [1, 1]} : vector<8x64xf32> to vector<8x32xf32>
    %237 = vector.extract_strided_slice %235 {offsets = [0, 32], sizes = [8, 32], strides = [1, 1]} : vector<8x64xf32> to vector<8x32xf32>
    %238 = vector.extract_strided_slice %224 {offsets = [0, 64], sizes = [8, 32], strides = [1, 1]} : vector<8x96xf32> to vector<8x32xf32>
    %239 = vector.extract_strided_slice %225 {offsets = [0, 64], sizes = [8, 32], strides = [1, 1]} : vector<8x96xf32> to vector<8x32xf32>
    %240 = arith.addf %239, %10 : vector<8x32xf32>
    %241 = arith.mulf %236, %240 : vector<8x32xf32>
    %242 = arith.addf %238, %241 : vector<8x32xf32>
    %243 = math.tanh %242 : vector<8x32xf32>
    %cst_63 = arith.constant 1.000000e+00 : f32
    %244 = vector.broadcast %cst_63 : f32 to vector<8x32xf32>
    %245 = arith.subf %244, %237 : vector<8x32xf32>
    %246 = arith.mulf %245, %243 : vector<8x32xf32>
    %247 = arith.mulf %237, %223 : vector<8x32xf32>
    %248 = arith.addf %246, %247 : vector<8x32xf32>
    %249 = vector.extract_strided_slice %31 {offsets = [24, 0], sizes = [8, 96], strides = [1, 1]} : vector<32x96xf32> to vector<8x96xf32>
    %cst_64 = arith.constant dense<0.000000e+00> : vector<8x96xf32>
    %250 = tpu.matmul %248, %6, %cst_64 {dimension_numbers = #tpu.dot_dimension_numbers<[1], [0], [0], [1], [0, 0, 1, 1], [], []>} : vector<8x32xf32>, vector<32x96xf32>, vector<8x96xf32> -> vector<8x96xf32>
    %251 = vector.extract_strided_slice %249 {offsets = [0, 0], sizes = [8, 64], strides = [1, 1]} : vector<8x96xf32> to vector<8x64xf32>
    %252 = vector.extract_strided_slice %250 {offsets = [0, 0], sizes = [8, 64], strides = [1, 1]} : vector<8x96xf32> to vector<8x64xf32>
    %253 = arith.addf %251, %252 : vector<8x64xf32>
    %cst_65 = arith.constant 5.000000e-01 : f32
    %254 = vector.broadcast %cst_65 : f32 to vector<8x64xf32>
    %255 = arith.mulf %254, %253 : vector<8x64xf32>
    %256 = math.tanh %255 : vector<8x64xf32>
    %cst_66 = arith.constant 5.000000e-01 : f32
    %257 = vector.broadcast %cst_66 : f32 to vector<8x64xf32>
    %258 = arith.mulf %257, %256 : vector<8x64xf32>
    %cst_67 = arith.constant 5.000000e-01 : f32
    %259 = vector.broadcast %cst_67 : f32 to vector<8x64xf32>
    %260 = arith.addf %258, %259 : vector<8x64xf32>
    %261 = vector.extract_strided_slice %260 {offsets = [0, 0], sizes = [8, 32], strides = [1, 1]} : vector<8x64xf32> to vector<8x32xf32>
    %262 = vector.extract_strided_slice %260 {offsets = [0, 32], sizes = [8, 32], strides = [1, 1]} : vector<8x64xf32> to vector<8x32xf32>
    %263 = vector.extract_strided_slice %249 {offsets = [0, 64], sizes = [8, 32], strides = [1, 1]} : vector<8x96xf32> to vector<8x32xf32>
    %264 = vector.extract_strided_slice %250 {offsets = [0, 64], sizes = [8, 32], strides = [1, 1]} : vector<8x96xf32> to vector<8x32xf32>
    %265 = arith.addf %264, %10 : vector<8x32xf32>
    %266 = arith.mulf %261, %265 : vector<8x32xf32>
    %267 = arith.addf %263, %266 : vector<8x32xf32>
    %268 = math.tanh %267 : vector<8x32xf32>
    %cst_68 = arith.constant 1.000000e+00 : f32
    %269 = vector.broadcast %cst_68 : f32 to vector<8x32xf32>
    %270 = arith.subf %269, %262 : vector<8x32xf32>
    %271 = arith.mulf %270, %268 : vector<8x32xf32>
    %272 = arith.mulf %262, %248 : vector<8x32xf32>
    %273 = arith.addf %271, %272 : vector<8x32xf32>
    %274 = tpu.concatenate %198, %223, %248, %273 in 0 : vector<8x32xf32>, vector<8x32xf32>, vector<8x32xf32>, vector<8x32xf32> -> vector<32x32xf32>
    %cst_69 = arith.constant dense<0.000000e+00> : vector<32x32xf32>
    %275 = tpu.matmul %274, %11, %cst_69 {dimension_numbers = #tpu.dot_dimension_numbers<[1], [0], [0], [1], [0, 0, 1, 1], [], []>} : vector<32x32xf32>, vector<32x32xf32>, vector<32x32xf32> -> vector<32x32xf32>
    %276 = vector.broadcast %12 : vector<1x32xf32> to vector<32x32xf32>
    %277 = arith.addf %275, %276 : vector<32x32xf32>
    %cst_70 = arith.constant 0.000000e+00 : f32
    %278 = vector.broadcast %cst_70 : f32 to vector<32x32xf32>
    %279 = arith.maximumf %277, %278 : vector<32x32xf32>
    %cst_71 = arith.constant dense<0.000000e+00> : vector<32x4xf32>
    %280 = tpu.matmul %279, %13, %cst_71 {dimension_numbers = #tpu.dot_dimension_numbers<[1], [0], [0], [1], [0, 0, 1, 1], [], []>} : vector<32x32xf32>, vector<32x4xf32>, vector<32x4xf32> -> vector<32x4xf32>
    %281 = vector.broadcast %14 : vector<1x4xf32> to vector<32x4xf32>
    %282 = arith.addf %280, %281 : vector<32x4xf32>
    %283 = vector.extract_strided_slice %282 {offsets = [0, 0], sizes = [32, 2], strides = [1, 1]} : vector<32x4xf32> to vector<32x2xf32>
    %284 = vector.extract_strided_slice %282 {offsets = [0, 2], sizes = [32, 2], strides = [1, 1]} : vector<32x4xf32> to vector<32x2xf32>
    %cst_72 = arith.constant 0.000000e+00 : f32
    %285 = vector.broadcast %cst_72 : f32 to vector<32x2xf32>
    %286 = arith.maximumf %284, %285 : vector<32x2xf32>
    %287 = math.absf %284 : vector<32x2xf32>
    %cst_73 = arith.constant 0.000000e+00 : f32
    %288 = vector.broadcast %cst_73 : f32 to vector<32x2xf32>
    %289 = arith.subf %288, %287 : vector<32x2xf32>
    %290 = math.exp %289 : vector<32x2xf32>
    %cst_74 = arith.constant 1.000000e+00 : f32
    %291 = vector.broadcast %cst_74 : f32 to vector<32x2xf32>
    %292 = arith.addf %291, %290 : vector<32x2xf32>
    %293 = math.log %292 : vector<32x2xf32>
    %294 = arith.addf %286, %293 : vector<32x2xf32>
    %cst_75 = arith.constant 1.000000e-03 : f32
    %295 = vector.broadcast %cst_75 : f32 to vector<32x2xf32>
    %296 = arith.addf %294, %295 : vector<32x2xf32>
    %297 = arith.addf %17, %283 : vector<32x2xf32>
    %298 = arith.subf %16, %297 : vector<32x2xf32>
    %299 = arith.divf %298, %296 : vector<32x2xf32>
    %300 = arith.mulf %299, %299 : vector<32x2xf32>
    %cst_76 = arith.constant dense<0.000000e+00> : vector<32xf32>
    %301 = vector.multi_reduction <add>, %300, %cst_76 [1] : vector<32x2xf32> to vector<32xf32>
    %302 = vector.shape_cast %301 : vector<32xf32> to vector<32x1xf32>
    %303 = math.log %296 : vector<32x2xf32>
    %cst_77 = arith.constant dense<0.000000e+00> : vector<32xf32>
    %304 = vector.multi_reduction <add>, %303, %cst_77 [1] : vector<32x2xf32> to vector<32xf32>
    %305 = vector.shape_cast %304 : vector<32xf32> to vector<32x1xf32>
    %cst_78 = arith.constant 0.000000e+00 : f32
    %306 = vector.broadcast %cst_78 : f32 to vector<8x1xf32>
    %cst_79 = arith.constant 0.000000e+00 : f32
    %307 = vector.broadcast %cst_79 : f32 to vector<8x1xf32>
    %308 = vector.extract_strided_slice %302 {offsets = [0, 0], sizes = [8, 1], strides = [1, 1]} : vector<32x1xf32> to vector<8x1xf32>
    %309 = arith.addf %306, %308 : vector<8x1xf32>
    %310 = vector.extract_strided_slice %305 {offsets = [0, 0], sizes = [8, 1], strides = [1, 1]} : vector<32x1xf32> to vector<8x1xf32>
    %311 = arith.addf %307, %310 : vector<8x1xf32>
    %312 = vector.extract_strided_slice %302 {offsets = [8, 0], sizes = [8, 1], strides = [1, 1]} : vector<32x1xf32> to vector<8x1xf32>
    %313 = arith.addf %309, %312 : vector<8x1xf32>
    %314 = vector.extract_strided_slice %305 {offsets = [8, 0], sizes = [8, 1], strides = [1, 1]} : vector<32x1xf32> to vector<8x1xf32>
    %315 = arith.addf %311, %314 : vector<8x1xf32>
    %316 = vector.extract_strided_slice %302 {offsets = [16, 0], sizes = [8, 1], strides = [1, 1]} : vector<32x1xf32> to vector<8x1xf32>
    %317 = arith.addf %313, %316 : vector<8x1xf32>
    %318 = vector.extract_strided_slice %305 {offsets = [16, 0], sizes = [8, 1], strides = [1, 1]} : vector<32x1xf32> to vector<8x1xf32>
    %319 = arith.addf %315, %318 : vector<8x1xf32>
    %320 = vector.extract_strided_slice %302 {offsets = [24, 0], sizes = [8, 1], strides = [1, 1]} : vector<32x1xf32> to vector<8x1xf32>
    %321 = arith.addf %317, %320 : vector<8x1xf32>
    %322 = vector.extract_strided_slice %305 {offsets = [24, 0], sizes = [8, 1], strides = [1, 1]} : vector<32x1xf32> to vector<8x1xf32>
    %323 = arith.addf %319, %322 : vector<8x1xf32>
    %cst_80 = arith.constant -5.000000e-01 : f32
    %324 = vector.broadcast %cst_80 : f32 to vector<8x1xf32>
    %325 = arith.mulf %324, %321 : vector<8x1xf32>
    %cst_81 = arith.constant 7.35150814 : f32
    %326 = vector.broadcast %cst_81 : f32 to vector<8x1xf32>
    %327 = arith.subf %325, %326 : vector<8x1xf32>
    %328 = tpu.iota {dimensions = array<i32: 1>} : vector<8x2xi32>
    %c0_i32 = arith.constant 0 : i32
    %329 = vector.broadcast %c0_i32 : i32 to vector<8x2xi32>
    %330 = arith.cmpi eq, %328, %329 : vector<8x2xi32>
    %331 = vector.shape_cast %327 : vector<8x1xf32> to vector<8x1xf32>
    %332 = vector.broadcast %331 : vector<8x1xf32> to vector<8x2xf32>
    %333 = vector.shape_cast %323 : vector<8x1xf32> to vector<8x1xf32>
    %334 = vector.broadcast %333 : vector<8x1xf32> to vector<8x2xf32>
    %335 = arith.select %330, %332, %334 : vector<8x2xi1>, vector<8x2xf32>
    %c0_82 = arith.constant 0 : index
    %c0_83 = arith.constant 0 : index
    %336 = vector.load %arg16[%c0_82, %c0_83] : memref<8x2xf32, #tpu.memory_space<vmem>>, vector<8x2xf32>
    tpu.vector_store %arg16[%c0_82, %c0_83], %335 {strides = array<i32>} : memref<8x2xf32, #tpu.memory_space<vmem>>, vector<8x2xf32>,
    return
  }
}

</mosaic_0001>

<bundles_post_ra>
// kernel: tpu_custom_call.1
= control target key start
LH: loop header
LB: loop body
LE: loop exit
PB: predicated region body
PF: predicated region fallthrough
CT: control target
= control target key end

     0   :  { %vm125_vm0 = vcmask 1041408   ;;  %vm100_vm1 = vcmask 15360   ;;  %v1314_v18 = vmov 0.0   ;;  %vm197_vm3 = vcmask 130048   ;;  %s1317_s26 = smov 32   ;;  %s1799_s3 = inlined_call_operand.vmem [shape: f32[2,16], index: 3, kind: input, shape index: {}]   ;;  %s1800_s0 = inlined_call_operand.vmem [shape: f32[64,2], index: 0, kind: input, shape index: {}]   ;;  %s1801_s4 = inlined_call_operand.vmem [shape: f32[1,16], index: 4, kind: input, shape index: {}]   ;;  %s1802_s8 = inlined_call_operand.vmem [shape: f32[2,96], index: 8, kind: input, shape index: {}]   ;;  %s1803_s2 = inlined_call_operand.vmem [shape: f32[32,2], index: 2, kind: input, shape index: {}]   ;;  %s1804_s6 = inlined_call_operand.vmem [shape: f32[32,128], index: 6, kind: input, shape index: {}]   ;;  %s1805_s5 = inlined_call_operand.vmem [shape: f32[16,128], index: 5, kind: input, shape index: {}]   ;;  %s1806_s10 = inlined_call_operand.vmem [shape: f32[1,96], index: 10, kind: input, shape index: {}]   ;;  %s1807_s7 = inlined_call_operand.vmem [shape: f32[1,128], index: 7, kind: input, shape index: {}]   ;;  %s1808_s9 = inlined_call_operand.vmem [shape: f32[32,96], index: 9, kind: input, shape index: {}]   ;;  %s1809_s11 = inlined_call_operand.vmem [shape: f32[1,32], index: 11, kind: input, shape index: {}]   ;;  %s1810_s12 = inlined_call_operand.vmem [shape: f32[32,32], index: 12, kind: input, shape index: {}]   ;;  %s1811_s13 = inlined_call_operand.vmem [shape: f32[1,32], index: 13, kind: input, shape index: {}]   ;;  %s1812_s14 = inlined_call_operand.vmem [shape: f32[32,4], index: 14, kind: input, shape index: {}]   ;;  %s1813_s15 = inlined_call_operand.vmem [shape: f32[1,4], index: 15, kind: input, shape index: {}]   ;;  %s1814_s1 = inlined_call_operand.vmem [shape: f32[32,2], index: 1, kind: input, shape index: {}]   ;;  %s1815_s16 = inlined_call_operand.vmem [shape: f32[8,2], index: 16, kind: output, shape index: {}]  }
   0x1   :  { %1816 = sst [smem:[#allocation2_spill]] %s1799_s3  ;;  %v81_v1 = vld [vmem:[%s1800_s0] sm:$0xff]  ;;  %v82_v2 = vld [vmem:[%s1800_s0 + $0x8] sm:$0xff]  ;;  %v95_v4 = vld [vmem:[%s1803_s2 + $0x10] sm:$0xff]  ;;  %v310_v53 = vlaneseq  ;;  %v1315_v60 = vmov 0.5   ;;  %vm317_vm14 = vcmask 261120  }
   0x2   :  { %s1817_s23 = sld [smem:[#allocation2_spill]]  ;;  %v62_v3 = vld [vmem:[%s1802_s8] sm:$0x3]  ;;  %v1427_v5 = vld [vmem:[%s1804_s6 + $0x18] sm:$0xff]  ;;  %v87_v6 = vld [vmem:[%s1800_s0 + $0x30] sm:$0xff] }
   0x3   :  { %1219 = vmatpush.msk.msra.mxu3 %vm125_vm0, %v62_v3  ;;  %v56_v7 = vld [vmem:[%s1805_s5 + $0x8] sm:$0xff]  ;;  %1193 = vmatpush.msk.msra.mxu2 %vm125_vm0, %v62_v3  ;;  %v1442_v8 = vld [vmem:[%s1804_s6 + $0x10] sm:$0xff]  ;;  %v55_v9 = vld [vmem:[%s1805_s5] sm:$0xff]  ;;  %v1512_v55 = vand.u32 127, %v310_v53 }
   0x4   :  { %1196 = vmatmul.msk.f32.vlgmr.msra.gmra.mxu3 %vm100_vm1, %v95_v4  ;;  %v1451_v10 = vld [vmem:[%s1804_s6 + $0x8] sm:$0xff]  ;;  %v83_v11 = vld [vmem:[%s1800_s0 + $0x10] sm:$0xff]  ;;  %v1461_v12 = vld [vmem:[%s1804_s6] sm:$0xff] }
   0x5   :  { %333 = vmatpush.msrb.mxu3 %v1427_v5  ;;  %521 = vmatpush.msrb.mxu2 %v1427_v5  ;;  %v96_v13 = vld [vmem:[%s1803_s2 + $0x18] sm:$0xff]  ;;  %v85_v16 = vld [vmem:[%s1800_s0 + $0x20] sm:$0xff]  ;;  %v86_v17 = vld [vmem:[%s1800_s0 + $0x28] sm:$0xff]  ;;  %vm312_vm11 = vcmp.ge.s32.totalorder %v1512_v55, 64  ;;  %vm313_vm12 = vcmp.lt.s32.totalorder %v1512_v55, 96 }
   0x6   :  { %v88_v14 = vld [vmem:[%s1800_s0 + $0x38] sm:$0xff]  ;;  %v1226_v19 = vld [vmem:[%s1801_s4] ss:$0 sm:$0xff]  ;;  %vm314_vm13 = vmand %vm312_vm11, %vm313_vm12 }
   0x7   :  { %334 = vmatpush.msrb.mxu3 %v1442_v8  ;;  %522 = vmatpush.msrb.mxu2 %v1442_v8  ;;  %v84_v15 = vld [vmem:[%s1800_s0 + $0x18] sm:$0xff]  ;;  %v1519_v56 = vld [vmem:[%s1807_s7] ss:$0 sm:$0xff]  ;;  %v1522_v61 = vsel %vm314_vm13, 1.0, %v1315_v60  ;;  %s1316_s7 = smov 64  }
   0x8   :  { %v53_v0 = vld [vmem:[%s1817_s23] sm:$0x3] }
   0x9   :  { %1176 = vmatpush.msk.msra.mxu0 %vm125_vm0, %v53_v0  ;;  %1218 = vmatpush.msk.msra.mxu1 %vm125_vm0, %v53_v0 }
   0xa   :  { %1177 = vmatmul.msk.f32.vlgmr.msra.gmra.mxu0 %vm100_vm1, %v81_v1  ;;  %1183 = vmatmul.msk.f32.vlgmr.msra.gmra.mxu1 %vm100_vm1, %v87_v6  ;;  %v1525_v1 = vsel %vm314_vm13, 0.0, %v1315_v60 }
   0xb   :  { %236 = vmatpush.msrb.mxu1 %v56_v7  ;;  %335 = vmatpush.msrb.mxu3 %v1451_v10 }
   0xc   :  { %523 = vmatpush.msrb.mxu2 %v1451_v10  ;;  %1197 = vmatmul.msk.f32.gmra.mxu3 %vm100_vm1, %v96_v13 }
   0xd   :  { %237 = vmatpush.msrb.mxu1 %v55_v9  ;;  %336 = vmatpush.msrb.mxu3 %v1461_v12 }
   0xe   :  { %524 = vmatpush.msrb.mxu2 %v1461_v12 }
   0xf   :  { %380 = vmatpush.msra.mxu3 %v1427_v5 }
  0x11   :  { %381 = vmatpush.msra.mxu3 %v1442_v8 }
  0x12   :  { %1178 = vmatmul.msk.f32.gmra.mxu0 %vm100_vm1, %v82_v2  ;;  %1184 = vmatmul.msk.f32.gmra.mxu1 %vm100_vm1, %v88_v14 }
  0x13   :  { %382 = vmatpush.msra.mxu3 %v1451_v10 }
  0x14   :  { %337 = vmatmul.f32.vlgmr.msrb.gmra.mxu3 %v1314_v18 }
  0x15   :  { %383 = vmatpush.msra.mxu3 %v1461_v12 }
  0x17   :  { %427 = vmatpush.msrb.mxu3 %v1427_v5 }
  0x19   :  { %428 = vmatpush.msrb.mxu3 %v1442_v8 }
  0x1a   :  { %1179 = vmatmul.msk.f32.gmra.mxu0 %vm100_vm1, %v83_v11 }
  0x1b   :  { %429 = vmatpush.msrb.mxu3 %v1451_v10 }
  0x1d   :  { %430 = vmatpush.msrb.mxu3 %v1461_v12 }
  0x22   :  { %1180 = vmatmul.msk.f32.gmra.mxu0 %vm100_vm1, %v84_v15 }
  0x2a   :  { %1181 = vmatmul.msk.f32.gmra.mxu0 %vm100_vm1, %v85_v16 }
  0x32   :  { %1182 = vmatmul.msk.f32.gmra.mxu0 %vm100_vm1, %v86_v17 }
  0x87   :  { %v146_v20 = vpop.f32.mrf.mxu0  ;;  %v164_v40 = vpop.f32.mrf.mxu1 }
  0x88   :  { %v147_v21 = vadd.f32 %v1226_v19, %v146_v20  ;;  %v165_v44 = vadd.f32 %v1226_v19, %v164_v40  ;;  %v1508_v52 = vpop.f32.mrf.mxu3 }
  0x8a   :  { %vm170_vm2 = vcmp.ge.f32.partialorder %v147_v21, 0.0  ;;  %v178_v22 = vmul.f32 0.01, %v147_v21  ;;  %v184_v46 = vmul.f32 0.01, %v165_v44  ;;  %vm176_vm9 = vcmp.ge.f32.partialorder %v165_v44, 0.0 }
  0x8c   :  { %v186_v23 = vsel %vm170_vm2, %v147_v21, %v178_v22  ;;  %v192_v48 = vsel %vm176_vm9, %v165_v44, %v184_v46 }
  0x8d   :  { %1185 = vmatmul.msk.f32.vlgmr.msrb.gmra.mxu1 %vm197_vm3, %v186_v23 }
  0x8f   :  { %v149_v24 = vpop.f32.mrf.mxu0  ;;  %v167_v47 = vpop.f32.mrf.mxu1 }
  0x90   :  { %v150_v25 = vadd.f32 %v1226_v19, %v149_v24  ;;  %v168_v49 = vadd.f32 %v1226_v19, %v167_v47  ;;  %v1510_v54 = vpop.f32.mrf.mxu3 }
  0x92   :  { %v179_v26 = vmul.f32 0.01, %v150_v25  ;;  %vm171_vm4 = vcmp.ge.f32.partialorder %v150_v25, 0.0  ;;  %v185_v50 = vmul.f32 0.01, %v168_v49  ;;  %vm177_vm10 = vcmp.ge.f32.partialorder %v168_v49, 0.0 }
  0x94   :  { %v187_v27 = vsel %vm171_vm4, %v150_v25, %v179_v26  ;;  %v193_v51 = vsel %vm177_vm10, %v168_v49, %v185_v50 }
  0x95   :  { %1186 = vmatmul.msk.f32.gmra.mxu1 %vm197_vm3, %v187_v27 }
  0x97   :  { %v152_v28 = vpop.f32.mrf.mxu0 }
  0x98   :  { %v153_v29 = vadd.f32 %v1226_v19, %v152_v28  ;;  %v338_v58 = vpop.f32.mrf.mxu3 }
  0x9a   :  { %v180_v30 = vmul.f32 0.01, %v153_v29  ;;  %vm172_vm5 = vcmp.ge.f32.partialorder %v153_v29, 0.0 }
  0x9c   :  { %v188_v31 = vsel %vm172_vm5, %v153_v29, %v180_v30 }
  0x9d   :  { %1187 = vmatmul.msk.f32.gmra.mxu1 %vm197_vm3, %v188_v31 }
  0x9f   :  { %v155_v32 = vpop.f32.mrf.mxu0 }
  0xa0   :  { %v156_v33 = vadd.f32 %v1226_v19, %v155_v32 }
  0xa2   :  { %v181_v34 = vmul.f32 0.01, %v156_v33  ;;  %vm173_vm6 = vcmp.ge.f32.partialorder %v156_v33, 0.0 }
  0xa4   :  { %v189_v35 = vsel %vm173_vm6, %v156_v33, %v181_v34 }
  0xa5   :  { %1188 = vmatmul.msk.f32.gmra.mxu1 %vm197_vm3, %v189_v35 }
  0xa7   :  { %v158_v36 = vpop.f32.mrf.mxu0 }
  0xa8   :  { %v159_v37 = vadd.f32 %v1226_v19, %v158_v36 }
  0xaa   :  { %v182_v38 = vmul.f32 0.01, %v159_v37  ;;  %vm174_vm7 = vcmp.ge.f32.partialorder %v159_v37, 0.0 }
  0xac   :  { %v190_v39 = vsel %vm174_vm7, %v159_v37, %v182_v38 }
  0xad   :  { %1189 = vmatmul.msk.f32.gmra.mxu1 %vm197_vm3, %v190_v39 }
  0xaf   :  { %v161_v41 = vpop.f32.mrf.mxu0 }
  0xb0   :  { %v162_v42 = vadd.f32 %v1226_v19, %v161_v41 }
  0xb2   :  { %v183_v43 = vmul.f32 0.01, %v162_v42  ;;  %vm175_vm8 = vcmp.ge.f32.partialorder %v162_v42, 0.0 }
  0xb4   :  { %v191_v45 = vsel %vm175_vm8, %v162_v42, %v183_v43 }
  0xb5   :  { %1190 = vmatmul.msk.f32.gmra.mxu1 %vm197_vm3, %v191_v45 }
  0xbd   :  { %1191 = vmatmul.msk.f32.gmra.mxu1 %vm197_vm3, %v192_v48 }
  0xc5   :  { %1192 = vmatmul.msk.f32.gmra.mxu1 %vm197_vm3, %v193_v51 }
 0x10a   :  { %v239_v57 = vpop.f32.mrf.mxu1 }
 0x10b   :  { %v240_v59 = vadd.f32 %v1519_v56, %v239_v57 }
 0x10d   :  { %v341_v62 = vadd.f32 %v338_v58, %v240_v59 }
 0x10f   :  { %v342_v63 = vmul.f32 %v341_v62, %v1522_v61 }
 0x111   :  { %1232 = vtanh.f32 %v342_v63 }
 0x112   :  { %v242_v17 = vpop.f32.mrf.mxu1 }
 0x113   :  { %v243_v18 = vadd.f32 %v1519_v56, %v242_v17 }
 0x117   :  { %v1233_v0 = vpop.eup %1232 }
 0x118   :  { %v344_v2 = vmul.f32 %v1233_v0, %v1522_v61 }
 0x11a   :  { %v345_v3 = vadd.f32 %v344_v2, %v1525_v1  ;;  %v245_v34 = vpop.f32.mrf.mxu1 }
 0x11b   :  { %v246_v35 = vadd.f32 %v1519_v56, %v245_v34 }
 0x11c   :  { %348 = vrot.lane.b32.xlu0 %v345_v3, %s1316_s7  ;;  %v346_v7 = vmul.f32 0.0, %v345_v3 }
 0x122   :  { %v248_v51 = vpop.f32.mrf.mxu1 }
 0x123   :  { %v249_v53 = vadd.f32 %v1519_v56, %v248_v51 }
 0x18e   :  { %v349_v4 = vpop.permute.xlu0 %348 }
 0x18f   :  { %v351_v6 = vmul.f32 %v349_v4, %v345_v3 }
 0x191   :  { %353 = vrot.lane.b32.xlu0 %v351_v6, %s1317_s26 }
 0x203   :  { %v354_v9 = vpop.permute.xlu0 %353 }
 0x204   :  { %v356_v11 = vadd.f32 %v354_v9, %v346_v7  ;;  %v1574_v9 = vld [vmem:[%s1803_s2] sm:$0xff] }
 0x205   :  { %1194 = vmatmul.msk.f32.vlgmr.msra.gmra.mxu2 %vm100_vm1, %v1574_v9 }
 0x206   :  { %1234 = vtanh.f32 %v356_v11  ;;  %615 = vmatpush.msra.mxu2 %v1427_v5 }
 0x208   :  { %616 = vmatpush.msra.mxu2 %v1442_v8 }
 0x20a   :  { %617 = vmatpush.msra.mxu2 %v1451_v10 }
 0x20c   :  { %v1235_v13 = vpop.eup %1234  ;;  %618 = vmatpush.msra.mxu2 %v1461_v12 }
 0x20d   :  { %359 = vrot.lane.b32.xlu1 %v1235_v13, %s1316_s7 }
 0x27f   :  { %v360_v14 = vpop.permute.xlu1 %359 }
 0x280   :  { %v362_v15 = vmul.f32 %v360_v14, %v345_v3 }
 0x282   :  { %364 = vrot.lane.b32.xlu1 %v362_v15, %s1317_s26 }
 0x2f4   :  { %v365_v16 = vpop.permute.xlu1 %364 }
 0x2f5   :  { %1198 = vmatmul.msk.f32.vlgmr.msra.gmra.mxu3 %vm317_vm14, %v365_v16  ;;  %v251_v16 = vpop.f32.mrf.mxu1 }
 0x2f6   :  { %474 = vmatpush.msra.mxu3 %v1427_v5  ;;  %v252_v17 = vadd.f32 %v1519_v56, %v251_v16 }
 0x2f8   :  { %475 = vmatpush.msra.mxu3 %v1442_v8 }
 0x2fa   :  { %476 = vmatpush.msra.mxu3 %v1451_v10 }
 0x2fc   :  { %477 = vmatpush.msra.mxu3 %v1461_v12 }
 0x378   :  { %v385_v19 = vpop.f32.mrf.mxu3 }
 0x379   :  { %v388_v20 = vadd.f32 %v385_v19, %v243_v18 }
 0x37b   :  { %v389_v21 = vmul.f32 %v388_v20, %v1522_v61 }
 0x37d   :  { %1236 = vtanh.f32 %v389_v21 }
 0x383   :  { %v1237_v22 = vpop.eup %1236 }
 0x384   :  { %v391_v23 = vmul.f32 %v1237_v22, %v1522_v61 }
 0x386   :  { %v392_v24 = vadd.f32 %v391_v23, %v1525_v1 }
 0x388   :  { %395 = vrot.lane.b32.xlu2 %v392_v24, %s1316_s7  ;;  %v393_v27 = vmul.f32 %v392_v24, %v356_v11  ;;  %v1583_v11 = vld [vmem:[%s1803_s2 + $0x8] sm:$0xff] }
 0x389   :  { %1195 = vmatmul.msk.f32.gmra.mxu2 %vm100_vm1, %v1583_v11 }
 0x3e2   :  { %v396_v25 = vpop.permute.xlu2 %395 }
 0x3e3   :  { %v398_v26 = vmul.f32 %v396_v25, %v392_v24 }
 0x3e5   :  { %400 = vrot.lane.b32.xlu2 %v398_v26, %s1317_s26 }
 0x43f   :  { %v401_v28 = vpop.permute.xlu2 %400 }
 0x440   :  { %v403_v29 = vadd.f32 %v401_v28, %v393_v27 }
 0x442   :  { %1238 = vtanh.f32 %v403_v29 }
 0x448   :  { %v1239_v30 = vpop.eup %1238 }
 0x449   :  { %406 = vrot.lane.b32.xlu0 %v1239_v30, %s1316_s7 }
 0x4bb   :  { %v407_v31 = vpop.permute.xlu0 %406 }
 0x4bc   :  { %v409_v32 = vmul.f32 %v407_v31, %v392_v24  ;;  %v254_v31 = vpop.f32.mrf.mxu1 }
 0x4be   :  { %411 = vrot.lane.b32.xlu1 %v409_v32, %s1317_s26  ;;  %v255_v32 = vadd.f32 %v1519_v56, %v254_v31 }
 0x530   :  { %v412_v33 = vpop.permute.xlu1 %411 }
 0x531   :  { %1199 = vmatmul.msk.f32.vlgmr.msrb.gmra.mxu3 %vm317_vm14, %v412_v33 }
 0x532   :  { %568 = vmatpush.msrb.mxu3 %v1427_v5 }
 0x534   :  { %569 = vmatpush.msrb.mxu3 %v1442_v8 }
 0x536   :  { %570 = vmatpush.msrb.mxu3 %v1451_v10 }
 0x538   :  { %571 = vmatpush.msrb.mxu3 %v1461_v12 }
 0x5b4   :  { %v432_v36 = vpop.f32.mrf.mxu3 }
 0x5b5   :  { %v435_v37 = vadd.f32 %v432_v36, %v246_v35 }
 0x5b7   :  { %v436_v38 = vmul.f32 %v435_v37, %v1522_v61 }
 0x5b9   :  { %1240 = vtanh.f32 %v436_v38 }
 0x5bf   :  { %v1241_v39 = vpop.eup %1240 }
 0x5c0   :  { %v438_v40 = vmul.f32 %v1241_v39, %v1522_v61 }
 0x5c2   :  { %v439_v41 = vadd.f32 %v438_v40, %v1525_v1 }
 0x5c4   :  { %442 = vrot.lane.b32.xlu2 %v439_v41, %s1316_s7  ;;  %v440_v44 = vmul.f32 %v439_v41, %v403_v29 }
 0x61e   :  { %v443_v42 = vpop.permute.xlu2 %442 }
 0x61f   :  { %v445_v43 = vmul.f32 %v443_v42, %v439_v41 }
 0x621   :  { %447 = vrot.lane.b32.xlu0 %v445_v43, %s1317_s26 }
 0x693   :  { %v448_v45 = vpop.permute.xlu0 %447 }
 0x694   :  { %v450_v46 = vadd.f32 %v448_v45, %v440_v44 }
 0x696   :  { %1242 = vtanh.f32 %v450_v46 }
 0x69c   :  { %v1243_v47 = vpop.eup %1242 }
 0x69d   :  { %453 = vrot.lane.b32.xlu1 %v1243_v47, %s1316_s7 }
 0x70f   :  { %v454_v48 = vpop.permute.xlu1 %453 }
 0x710   :  { %v456_v49 = vmul.f32 %v454_v48, %v439_v41  ;;  %v257_v48 = vpop.f32.mrf.mxu1 }
 0x712   :  { %458 = vrot.lane.b32.xlu2 %v456_v49, %s1317_s26  ;;  %v258_v49 = vadd.f32 %v1519_v56, %v257_v48 }
 0x76c   :  { %v459_v50 = vpop.permute.xlu2 %458 }
 0x76d   :  { %1200 = vmatmul.msk.f32.vlgmr.msra.gmra.mxu3 %vm317_vm14, %v459_v50 }
 0x76e   :  { %662 = vmatpush.msra.mxu3 %v1427_v5  ;;  %v1591_v5 = vpop.f32.mrf.mxu2 }
 0x770   :  { %663 = vmatpush.msra.mxu3 %v1442_v8 }
 0x772   :  { %664 = vmatpush.msra.mxu3 %v1451_v10 }
 0x774   :  { %665 = vmatpush.msra.mxu3 %v1461_v12 }
 0x776   :  { %v1593_v8 = vpop.f32.mrf.mxu2 }
 0x7f0   :  { %v479_v57 = vpop.f32.mrf.mxu3 }
 0x7f1   :  { %v482_v58 = vadd.f32 %v479_v57, %v249_v53 }
 0x7f3   :  { %v483_v59 = vmul.f32 %v482_v58, %v1522_v61 }
 0x7f5   :  { %1244 = vtanh.f32 %v483_v59 }
 0x7fb   :  { %v1245_v60 = vpop.eup %1244 }
 0x7fc   :  { %v485_v62 = vmul.f32 %v1245_v60, %v1522_v61 }
 0x7fe   :  { %v486_v63 = vadd.f32 %v485_v62, %v1525_v1 }
 0x800   :  { %489 = vrot.lane.b32.xlu0 %v486_v63, %s1316_s7  ;;  %v487_v3 = vmul.f32 %v486_v63, %v450_v46 }
 0x872   :  { %v490_v0 = vpop.permute.xlu0 %489 }
 0x873   :  { %v492_v2 = vmul.f32 %v490_v0, %v486_v63 }
 0x875   :  { %494 = vrot.lane.b32.xlu1 %v492_v2, %s1317_s26 }
 0x8e7   :  { %v495_v4 = vpop.permute.xlu1 %494 }
 0x8e8   :  { %v497_v6 = vadd.f32 %v495_v4, %v487_v3 }
 0x8ea   :  { %1246 = vtanh.f32 %v497_v6 }
 0x8f0   :  { %v1247_v7 = vpop.eup %1246 }
 0x8f1   :  { %500 = vrot.lane.b32.xlu2 %v1247_v7, %s1316_s7 }
 0x94b   :  { %v501_v13 = vpop.permute.xlu2 %500 }
 0x94c   :  { %v503_v14 = vmul.f32 %v501_v13, %v486_v63  ;;  %v260_v13 = vpop.f32.mrf.mxu1 }
 0x94e   :  { %505 = vrot.lane.b32.xlu0 %v503_v14, %s1317_s26  ;;  %v261_v14 = vadd.f32 %v1519_v56, %v260_v13 }
 0x9c0   :  { %v506_v15 = vpop.permute.xlu0 %505 }
 0x9c1   :  { %1201 = vmatmul.msk.f32.vlgmr.msrb.gmra.mxu2 %vm317_vm14, %v506_v15 }
 0xa44   :  { %v526_v10 = vpop.f32.mrf.mxu2 }
 0xa45   :  { %v529_v18 = vadd.f32 %v526_v10, %v252_v17 }
 0xa47   :  { %v530_v12 = vmul.f32 %v529_v18, %v1522_v61 }
 0xa49   :  { %1248 = vtanh.f32 %v530_v12 }
 0xa4f   :  { %v1249_v19 = vpop.eup %1248 }
 0xa50   :  { %v532_v20 = vmul.f32 %v1249_v19, %v1522_v61 }
 0xa52   :  { %v533_v21 = vadd.f32 %v532_v20, %v1525_v1 }
 0xa54   :  { %536 = vrot.lane.b32.xlu1 %v533_v21, %s1316_s7  ;;  %v534_v24 = vmul.f32 %v533_v21, %v497_v6 }
 0xac6   :  { %v537_v22 = vpop.permute.xlu1 %536 }
 0xac7   :  { %v539_v23 = vmul.f32 %v537_v22, %v533_v21 }
 0xac9   :  { %541 = vrot.lane.b32.xlu2 %v539_v23, %s1317_s26 }
 0xb23   :  { %v542_v25 = vpop.permute.xlu2 %541 }
 0xb24   :  { %v544_v26 = vadd.f32 %v542_v25, %v534_v24  ;;  %v66_v24 = vld [vmem:[%s1808_s9 + $0x18] sm:$0xff]  ;;  %v63_v25 = vld [vmem:[%s1808_s9] sm:$0xff] }
 0xb25   :  { %709 = vmatpush.msrb.mxu2 %v66_v24 }
 0xb26   :  { %1250 = vtanh.f32 %v544_v26 }
 0xb2c   :  { %v1251_v27 = vpop.eup %1250 }
 0xb2d   :  { %547 = vrot.lane.b32.xlu0 %v1251_v27, %s1316_s7 }
 0xb9f   :  { %v548_v28 = vpop.permute.xlu0 %547 }
 0xba0   :  { %v550_v29 = vmul.f32 %v548_v28, %v533_v21  ;;  %v1229_v28 = vld [vmem:[%s1809_s11] ss:$0 sm:$0xff]  ;;  %s1318_s11 = smov 96  }
 0xba2   :  { %552 = vrot.lane.b32.xlu1 %v550_v29, %s1317_s26 }
 0xc14   :  { %v553_v30 = vpop.permute.xlu1 %552 }
 0xc15   :  { %1202 = vmatmul.msk.f32.vlgmr.msrb.gmra.mxu3 %vm317_vm14, %v553_v30 }
 0xc16   :  { %765 = vmatpush.msrb.mxu3 %v66_v24 }
 0xc98   :  { %v573_v33 = vpop.f32.mrf.mxu3 }
 0xc99   :  { %v576_v34 = vadd.f32 %v573_v33, %v255_v32  ;;  %v1655_v33 = vld [vmem:[%s1806_s10] ss:$0 sm:$0xff] }
 0xc9b   :  { %v577_v35 = vmul.f32 %v576_v34, %v1522_v61  ;;  %v299_v34 = vadd.f32 %v1655_v33, %v1591_v5  ;;  %v74_v5 = vld [vmem:[%s1810_s12 + $0x18] sm:$0xff] }
 0xc9c   :  { %918 = vmatpush.msrb.mxu0 %v74_v5 }
 0xc9d   :  { %1252 = vtanh.f32 %v577_v35 }
 0xca3   :  { %v1253_v36 = vpop.eup %1252 }
 0xca4   :  { %v579_v37 = vmul.f32 %v1253_v36, %v1522_v61 }
 0xca6   :  { %v580_v38 = vadd.f32 %v579_v37, %v1525_v1 }
 0xca8   :  { %583 = vrot.lane.b32.xlu2 %v580_v38, %s1316_s7  ;;  %v581_v41 = vmul.f32 %v580_v38, %v544_v26 }
 0xd02   :  { %v584_v39 = vpop.permute.xlu2 %583 }
 0xd03   :  { %v586_v40 = vmul.f32 %v584_v39, %v580_v38 }
 0xd05   :  { %588 = vrot.lane.b32.xlu0 %v586_v40, %s1317_s26 }
 0xd77   :  { %v589_v42 = vpop.permute.xlu0 %588 }
 0xd78   :  { %v591_v43 = vadd.f32 %v589_v42, %v581_v41 }
 0xd7a   :  { %1254 = vtanh.f32 %v591_v43 }
 0xd80   :  { %v1255_v44 = vpop.eup %1254 }
 0xd81   :  { %594 = vrot.lane.b32.xlu1 %v1255_v44, %s1316_s7 }
 0xdf3   :  { %v595_v45 = vpop.permute.xlu1 %594 }
 0xdf4   :  { %v597_v46 = vmul.f32 %v595_v45, %v580_v38  ;;  %v73_v45 = vld [vmem:[%s1810_s12 + $0x10] sm:$0xff] }
 0xdf5   :  { %919 = vmatpush.msrb.mxu0 %v73_v45 }
 0xdf6   :  { %599 = vrot.lane.b32.xlu2 %v597_v46, %s1317_s26  ;;  %v72_v46 = vld [vmem:[%s1810_s12 + $0x8] sm:$0xff] }
 0xdf7   :  { %920 = vmatpush.msrb.mxu0 %v72_v46 }
 0xe50   :  { %v600_v47 = vpop.permute.xlu2 %599 }
 0xe51   :  { %1203 = vmatmul.msk.f32.vlgmr.msra.gmra.mxu2 %vm317_vm14, %v600_v47  ;;  %v71_v47 = vld [vmem:[%s1810_s12] sm:$0xff] }
 0xe52   :  { %921 = vmatpush.msrb.mxu0 %v71_v47 }
 0xed4   :  { %v620_v50 = vpop.f32.mrf.mxu2 }
 0xed5   :  { %v623_v51 = vadd.f32 %v620_v50, %v258_v49 }
 0xed7   :  { %v624_v53 = vmul.f32 %v623_v51, %v1522_v61 }
 0xed9   :  { %1256 = vtanh.f32 %v624_v53 }
 0xedf   :  { %v1257_v57 = vpop.eup %1256 }
 0xee0   :  { %v626_v58 = vmul.f32 %v1257_v57, %v1522_v61 }
 0xee2   :  { %v627_v59 = vadd.f32 %v626_v58, %v1525_v1 }
 0xee4   :  { %630 = vrot.lane.b32.xlu0 %v627_v59, %s1316_s7  ;;  %v628_v63 = vmul.f32 %v627_v59, %v591_v43 }
 0xf56   :  { %v631_v60 = vpop.permute.xlu0 %630 }
 0xf57   :  { %v633_v62 = vmul.f32 %v631_v60, %v627_v59 }
 0xf59   :  { %635 = vrot.lane.b32.xlu1 %v633_v62, %s1317_s26  ;;  %v302_v62 = vadd.f32 %v1655_v33, %v1593_v8 }
 0xfcb   :  { %v636_v0 = vpop.permute.xlu1 %635 }
 0xfcc   :  { %v638_v2 = vadd.f32 %v636_v0, %v628_v63 }
 0xfce   :  { %1258 = vtanh.f32 %v638_v2 }
 0xfd4   :  { %v1259_v3 = vpop.eup %1258 }
 0xfd5   :  { %641 = vrot.lane.b32.xlu2 %v1259_v3, %s1316_s7 }
0x102f   :  { %v642_v4 = vpop.permute.xlu2 %641 }
0x1030   :  { %v644_v6 = vmul.f32 %v642_v4, %v627_v59 }
0x1032   :  { %646 = vrot.lane.b32.xlu0 %v644_v6, %s1317_s26 }
0x10a4   :  { %v647_v7 = vpop.permute.xlu0 %646 }
0x10a5   :  { %1204 = vmatmul.msk.f32.vlgmr.msra.gmra.mxu3 %vm317_vm14, %v647_v7 }
0x1128   :  { %v667_v15 = vpop.f32.mrf.mxu3 }
0x1129   :  { %v670_v16 = vadd.f32 %v667_v15, %v261_v14 }
0x112b   :  { %v671_v17 = vmul.f32 %v670_v16, %v1522_v61 }
0x112d   :  { %1260 = vtanh.f32 %v671_v17 }
0x1133   :  { %v1261_v10 = vpop.eup %1260 }
0x1134   :  { %v673_v18 = vmul.f32 %v1261_v10, %v1522_v61  ;;  %v65_v61 = vld [vmem:[%s1808_s9 + $0x10] sm:$0xff] }
0x1135   :  { %710 = vmatpush.msrb.mxu2 %v65_v61  ;;  %766 = vmatpush.msrb.mxu3 %v65_v61 }
0x1136   :  { %v674_v12 = vadd.f32 %v673_v18, %v1525_v1  ;;  %v64_v1 = vld [vmem:[%s1808_s9 + $0x8] sm:$0xff] }
0x1137   :  { %711 = vmatpush.msrb.mxu2 %v64_v1  ;;  %767 = vmatpush.msrb.mxu3 %v64_v1 }
0x1138   :  { %677 = vrot.lane.b32.xlu1 %v674_v12, %s1316_s7  ;;  %v675_v21 = vmul.f32 %v674_v12, %v638_v2 }
0x1139   :  { %712 = vmatpush.msrb.mxu2 %v63_v25  ;;  %768 = vmatpush.msrb.mxu3 %v63_v25 }
0x113b   :  { %815 = vmatpush.msra.mxu2 %v66_v24  ;;  %865 = vmatpush.msra.mxu3 %v66_v24 }
0x113d   :  { %816 = vmatpush.msra.mxu2 %v65_v61  ;;  %866 = vmatpush.msra.mxu3 %v65_v61 }
0x113f   :  { %817 = vmatpush.msra.mxu2 %v64_v1  ;;  %867 = vmatpush.msra.mxu3 %v64_v1 }
0x1141   :  { %818 = vmatpush.msra.mxu2 %v63_v25  ;;  %868 = vmatpush.msra.mxu3 %v63_v25 }
0x11aa   :  { %v678_v19 = vpop.permute.xlu1 %677 }
0x11ab   :  { %v680_v20 = vmul.f32 %v678_v19, %v674_v12  ;;  %v78_v19 = vld [vmem:[%s1812_s14 + $0x10] sm:$0xff] }
0x11ad   :  { %682 = vrot.lane.b32.xlu2 %v680_v20, %s1317_s26  ;;  %v77_v20 = vld [vmem:[%s1812_s14 + $0x8] sm:$0xff] }
0x11b5   :  { %722 = vrot.lane.b32.xlu2 %v1229_v28, %s1316_s7 }
0x1207   :  { %v683_v22 = vpop.permute.xlu2 %682 }
0x1208   :  { %v685_v23 = vadd.f32 %v683_v22, %v675_v21  ;;  %v76_v21 = vld [vmem:[%s1812_s14] sm:$0xff] }
0x1209   :  { %v1698_v22 = vld [vmem:[%s1811_s13] ss:$0 sm:$0xff] }
0x120a   :  { %1262 = vtanh.f32 %v685_v23 }
0x120f   :  { %v1647_v30 = vpop.permute.xlu2 %722 }
0x1210   :  { %v1263_v56 = vpop.eup %1262 }
0x1211   :  { %688 = vrot.lane.b32.xlu0 %v1263_v56, %s1316_s7 }
0x1283   :  { %v689_v26 = vpop.permute.xlu0 %688 }
0x1284   :  { %v691_v27 = vmul.f32 %v689_v26, %v674_v12  ;;  %v79_v12 = vld [vmem:[%s1812_s14 + $0x18] sm:$0xff] }
0x1286   :  { %693 = vrot.lane.b32.xlu1 %v691_v27, %s1317_s26 }
0x12f8   :  { %v694_v29 = vpop.permute.xlu1 %693 }
0x12f9   :  { %1205 = vmatmul.msk.f32.vlgmr.msrb.gmra.mxu2 %vm317_vm14, %v694_v29  ;;  %v305_v29 = vadd.f32 %v1655_v33, %v1508_v52 }
0x12fa   :  { %966 = vmatpush.msrb.mxu2 %v79_v12 }
0x12fc   :  { %967 = vmatpush.msrb.mxu2 %v78_v19 }
0x12fe   :  { %968 = vmatpush.msrb.mxu2 %v77_v20 }
0x1300   :  { %969 = vmatpush.msrb.mxu2 %v76_v21 }
0x137c   :  { %v714_v31 = vpop.f32.mrf.mxu2 }
0x137d   :  { %v725_v32 = vadd.f32 %v1647_v30, %v714_v31  ;;  %v717_v35 = vadd.f32 %v714_v31, %v299_v34 }
0x137f   :  { %727 = vrot.lane.b32.xlu0 %v725_v32, %s1316_s7  ;;  %v718_v36 = vmul.f32 0.5, %v717_v35 }
0x1381   :  { %1264 = vtanh.f32 %v718_v36 }
0x1387   :  { %743 = vrot.lane.b32.xlu0 %v691_v27, %s1316_s7  ;;  %v1265_v37 = vpop.eup %1264 }
0x1388   :  { %v720_v38 = vmul.f32 0.5, %v1265_v37 }
0x138a   :  { %v721_v39 = vadd.f32 0.5, %v720_v38 }
0x138c   :  { %v737_v49 = vsub.f32 1.0, %v721_v39 }
0x13f1   :  { %v728_v40 = vpop.permute.xlu0 %727 }
0x13f2   :  { %v730_v41 = vmul.f32 %v728_v40, %v721_v39 }
0x13f4   :  { %732 = vrot.lane.b32.xlu1 %v730_v41, %s1316_s7 }
0x13f9   :  { %v744_v48 = vpop.permute.xlu0 %743 }
0x13fa   :  { %v746_v51 = vmul.f32 %v744_v48, %v721_v39 }
0x1466   :  { %v733_v42 = vpop.permute.xlu1 %732 }
0x1467   :  { %v735_v43 = vadd.f32 %v733_v42, %v299_v34 }
0x1469   :  { %1266 = vtanh.f32 %v735_v43 }
0x146f   :  { %v1267_v44 = vpop.eup %1266 }
0x1470   :  { %739 = vrot.lane.b32.xlu2 %v1267_v44, %s1318_s11 }
0x14ca   :  { %v740_v50 = vpop.permute.xlu2 %739 }
0x14cb   :  { %v742_v53 = vmul.f32 %v740_v50, %v737_v49 }
0x14cd   :  { %v747_v57 = vadd.f32 %v746_v51, %v742_v53  ;;  %v1725_v51 = vld [vmem:[%s1813_s15] ss:$0 sm:$0xff]  ;;  %s1319_s15 = smov 126  }
0x14cf   :  { %749 = vrot.lane.b32.xlu1 %v747_v57, %s1318_s11 }
0x1541   :  { %v750_v58 = vpop.permute.xlu1 %749 }
0x1542   :  { %1206 = vmatmul.msk.f32.vlgmr.msrb.gmra.mxu3 %vm317_vm14, %v750_v58  ;;  %1209 = vmatmul.msk.f32.vlgmr.msrb.gmra.mxu0 %vm317_vm14, %v750_v58 }
0x15bf   :  { %v923_v23 = vpop.f32.mrf.mxu0 }
0x15c0   :  { %v924_v24 = vadd.f32 %v1698_v22, %v923_v23 }
0x15c2   :  { %v935_v61 = vmax.f32 %v924_v24, 0.0 }
0x15c5   :  { %v770_v59 = vpop.f32.mrf.mxu3 }
0x15c6   :  { %v778_v60 = vadd.f32 %v770_v59, %v1647_v30  ;;  %v773_v63 = vadd.f32 %v770_v59, %v302_v62 }
0x15c8   :  { %780 = vrot.lane.b32.xlu2 %v778_v60, %s1316_s7  ;;  %v774_v0 = vmul.f32 0.5, %v773_v63 }
0x15ca   :  { %1268 = vtanh.f32 %v774_v0 }
0x15d0   :  { %v1269_v2 = vpop.eup %1268 }
0x15d1   :  { %v776_v3 = vmul.f32 0.5, %v1269_v2 }
0x15d3   :  { %v777_v4 = vadd.f32 0.5, %v776_v3 }
0x15d5   :  { %v790_v16 = vsub.f32 1.0, %v777_v4  ;;  %v796_v10 = vmul.f32 %v777_v4, %v747_v57 }
0x1622   :  { %v781_v6 = vpop.permute.xlu2 %780 }
0x1623   :  { %v783_v7 = vmul.f32 %v781_v6, %v777_v4 }
0x1625   :  { %785 = vrot.lane.b32.xlu0 %v783_v7, %s1316_s7 }
0x1697   :  { %v786_v13 = vpop.permute.xlu0 %785 }
0x1698   :  { %v788_v14 = vadd.f32 %v786_v13, %v302_v62  ;;  %v308_v62 = vadd.f32 %v1655_v33, %v1510_v54 }
0x169a   :  { %1270 = vtanh.f32 %v788_v14 }
0x16a0   :  { %v1271_v15 = vpop.eup %1270 }
0x16a1   :  { %792 = vrot.lane.b32.xlu1 %v1271_v15, %s1318_s11 }
0x1713   :  { %v793_v17 = vpop.permute.xlu1 %792 }
0x1714   :  { %v795_v8 = vmul.f32 %v793_v17, %v790_v16 }
0x1716   :  { %v797_v18 = vadd.f32 %v796_v10, %v795_v8 }
0x1718   :  { %799 = vrot.lane.b32.xlu2 %v797_v18, %s1318_s11 }
0x1772   :  { %v800_v56 = vpop.permute.xlu2 %799 }
0x1773   :  { %1207 = vmatmul.msk.f32.vlgmr.msra.gmra.mxu2 %vm317_vm14, %v800_v56  ;;  %1210 = vmatmul.msk.f32.gmra.mxu0 %vm317_vm14, %v800_v56 }
0x177b   :  { %1213 = vmatmul.msk.f32.vlgmr.msrb.gmra.mxu2 %vm317_vm14, %v935_v61 }
0x17f0   :  { %v926_v1 = vpop.f32.mrf.mxu0 }
0x17f1   :  { %v927_v25 = vadd.f32 %v1698_v22, %v926_v1 }
0x17f3   :  { %v936_v26 = vmax.f32 %v927_v25, 0.0 }
0x17f5   :  { %1214 = vmatmul.msk.f32.gmra.mxu2 %vm317_vm14, %v936_v26 }
0x17f6   :  { %v820_v27 = vpop.f32.mrf.mxu2 }
0x17f7   :  { %v828_v28 = vadd.f32 %v820_v27, %v1647_v30  ;;  %v823_v31 = vadd.f32 %v820_v27, %v305_v29 }
0x17f9   :  { %830 = vrot.lane.b32.xlu0 %v828_v28, %s1316_s7  ;;  %v824_v32 = vmul.f32 0.5, %v823_v31 }
0x17fb   :  { %1272 = vtanh.f32 %v824_v32 }
0x17fe   :  { %v971_v53 = vpop.f32.mrf.mxu2 }
0x17ff   :  { %v1728_v57 = vadd.f32 %v1725_v51, %v971_v53 }
0x1801   :  { %v1273_v34 = vpop.eup %1272  ;;  %v987_v58 = vand.u32 2147483647, %v1728_v57  ;;  %v983_v16 = vmax.f32 %v1728_v57, 0.0 }
0x1802   :  { %v826_v35 = vmul.f32 0.5, %v1273_v34 }
0x1803   :  { %v991_v59 = vsub.f32 0.0, %v987_v58 }
0x1804   :  { %v827_v36 = vadd.f32 0.5, %v826_v35 }
0x1805   :  { %v995_v60 = vmul.f32 1.442695, %v991_v59 }
0x1806   :  { %v840_v42 = vsub.f32 1.0, %v827_v36  ;;  %v846_v44 = vmul.f32 %v827_v36, %v797_v18 }
0x186b   :  { %v831_v37 = vpop.permute.xlu0 %830 }
0x186c   :  { %v833_v38 = vmul.f32 %v831_v37, %v827_v36 }
0x186e   :  { %835 = vrot.lane.b32.xlu1 %v833_v38, %s1316_s7 }
0x1878   :  { %v974_v33 = vpop.f32.mrf.mxu2 }
0x1879   :  { %v975_v10 = vadd.f32 %v1725_v51, %v974_v33  ;;  %v1023_v33 = vadd.f32 %v1728_v57, %v1574_v9 }
0x187b   :  { %v988_v8 = vand.u32 2147483647, %v975_v10  ;;  %v984_v1 = vmax.f32 %v975_v10, 0.0  ;;  %v1024_v59 = vadd.f32 %v975_v10, %v1583_v11 }
0x187d   :  { %v992_v18 = vsub.f32 0.0, %v988_v8  ;;  %v89_v8 = vld [vmem:[%s1814_s1] sm:$0xff] }
0x187f   :  { %v997_v12 = vmul.f32 1.442695, %v992_v18 }
0x18e0   :  { %v836_v39 = vpop.permute.xlu1 %835 }
0x18e1   :  { %v838_v40 = vadd.f32 %v836_v39, %v305_v29 }
0x18e3   :  { %1274 = vtanh.f32 %v838_v40 }
0x18e4   :  { %1276 = vpow2.f32 %v995_v60 }
0x18e9   :  { %v1275_v41 = vpop.eup %1274 }
0x18ea   :  { %842 = vrot.lane.b32.xlu2 %v1275_v41, %s1318_s11  ;;  %v1277_v0 = vpop.eup %1276 }
0x18eb   :  { %v1003_v2 = vadd.f32 1.0, %v1277_v0 }
0x1944   :  { %v843_v43 = vpop.permute.xlu2 %842 }
0x1945   :  { %v845_v52 = vmul.f32 %v843_v43, %v840_v42 }
0x1947   :  { %v1712_v5 = vadd.f32 %v846_v44, %v845_v52 }
0x1949   :  { %849 = vrot.lane.b32.xlu0 %v1712_v5, %s1318_s11 }
0x19bb   :  { %v850_v45 = vpop.permute.xlu0 %849 }
0x19bc   :  { %1208 = vmatmul.msk.f32.vlgmr.msra.gmra.mxu3 %vm317_vm14, %v850_v45  ;;  %1211 = vmatmul.msk.f32.gmra.mxu0 %vm317_vm14, %v850_v45 }
0x1a39   :  { %v929_v46 = vpop.f32.mrf.mxu0 }
0x1a3a   :  { %v930_v47 = vadd.f32 %v1698_v22, %v929_v46 }
0x1a3c   :  { %v937_v48 = vmax.f32 %v930_v47, 0.0 }
0x1a3e   :  { %1215 = vmatmul.msk.f32.gmra.mxu2 %vm317_vm14, %v937_v48 }
0x1a3f   :  { %v870_v49 = vpop.f32.mrf.mxu3 }
0x1a40   :  { %v878_v50 = vadd.f32 %v870_v49, %v1647_v30  ;;  %v873_v63 = vadd.f32 %v870_v49, %v308_v62 }
0x1a42   :  { %880 = vrot.lane.b32.xlu1 %v878_v50, %s1316_s7  ;;  %v874_v30 = vmul.f32 0.5, %v873_v63 }
0x1a44   :  { %1278 = vtanh.f32 %v874_v30  ;;  %v90_v30 = vld [vmem:[%s1814_s1 + $0x8] sm:$0xff] }
0x1a45   :  { %1280 = vlog2.f32 %v1003_v2 }
0x1a46   :  { %1282 = vpow2.f32 %v997_v12 }
0x1a4a   :  { %v1279_v3 = vpop.eup %1278 }
0x1a4b   :  { %v876_v4 = vmul.f32 0.5, %v1279_v3  ;;  %v1281_v6 = vpop.eup %1280  ;;  %v1028_v3 = vsub.f32 %v90_v30, %v1024_v59 }
0x1a4c   :  { %v1008_v15 = vmul.f32 0.6931472, %v1281_v6  ;;  %v1283_v19 = vpop.eup %1282 }
0x1a4d   :  { %v877_v7 = vadd.f32 0.5, %v876_v4  ;;  %v1004_v20 = vadd.f32 1.0, %v1283_v19  ;;  %v1027_v19 = vsub.f32 %v89_v8, %v1023_v33 }
0x1a4e   :  { %v1015_v17 = vadd.f32 %v1008_v15, %v983_v16 }
0x1a4f   :  { %1284 = vlog2.f32 %v1004_v20  ;;  %v890_v38 = vsub.f32 1.0, %v877_v7  ;;  %v896_v41 = vmul.f32 %v877_v7, %v1712_v5 }
0x1a50   :  { %v1019_v54 = vadd.f32 0.001, %v1015_v17 }
0x1a55   :  { %v1285_v56 = vpop.eup %1284 }
0x1a56   :  { %v1010_v24 = vmul.f32 0.6931472, %v1285_v56 }
0x1a58   :  { %v1016_v25 = vadd.f32 %v1010_v24, %v984_v1 }
0x1a5a   :  { %v1020_v26 = vadd.f32 0.001, %v1016_v25 }
0x1ab4   :  { %v881_v13 = vpop.permute.xlu1 %880 }
0x1ab5   :  { %v883_v14 = vmul.f32 %v881_v13, %v877_v7 }
0x1ab7   :  { %885 = vrot.lane.b32.xlu2 %v883_v14, %s1316_s7 }
0x1abf   :  { %1035 = vrot.lane.b32.xlu2 %v1019_v54, %s1319_s15 }
0x1ac1   :  { %v977_v29 = vpop.f32.mrf.mxu2 }
0x1ac2   :  { %v1741_v31 = vadd.f32 %v1725_v51, %v977_v29 }
0x1ac4   :  { %v989_v32 = vand.u32 2147483647, %v1741_v31  ;;  %v985_v52 = vmax.f32 %v1741_v31, 0.0 }
0x1ac6   :  { %v993_v34 = vsub.f32 0.0, %v989_v32 }
0x1ac8   :  { %v999_v35 = vmul.f32 1.442695, %v993_v34 }
0x1b11   :  { %v886_v21 = vpop.permute.xlu2 %885 }
0x1b12   :  { %v888_v23 = vadd.f32 %v886_v21, %v308_v62 }
0x1b14   :  { %1286 = vtanh.f32 %v888_v23 }
0x1b15   :  { %1288 = vlog2.f32 %v1019_v54 }
0x1b16   :  { %1290 = vpow2.f32 %v999_v35 }
0x1b19   :  { %v1036_v60 = vpop.permute.xlu2 %1035 }
0x1b1a   :  { %v1287_v61 = vpop.eup %1286  ;;  %v1058_v17 = vand.u32 2147483648, %v1036_v60  ;;  %vm1052_vm5 = vweird.f32 %v1036_v60  ;;  %v1056_v54 = vand.u32 2147483647, %v1036_v60 }
0x1b1b   :  { %892 = vrot.lane.b32.xlu0 %v1287_v61, %s1318_s11  ;;  %v1289_v27 = vpop.eup %1288 }
0x1b1c   :  { %v1124_v28 = vmul.f32 0.6931472, %v1289_v27  ;;  %v1291_v36 = vpop.eup %1290  ;;  %v1059_v18 = vor.u32 1.1754944e-38, %v1058_v17  ;;  %vm1057_vm7 = vcmp.eq.f32.partialorder %v1056_v54, 8.507059e+37  ;;  %v92_v54 = vld [vmem:[%s1814_s1 + $0x18] sm:$0xff] }
0x1b1d   :  { %v1005_v37 = vadd.f32 1.0, %v1291_v36 }
0x1b1f   :  { %1292 = vlog2.f32 %v1005_v37 }
0x1b23   :  { %1037 = vrot.lane.b32.xlu0 %v1020_v26, %s1319_s15 }
0x1b25   :  { %v1293_v39 = vpop.eup %1292 }
0x1b26   :  { %v1012_v44 = vmul.f32 0.6931472, %v1293_v39 }
0x1b28   :  { %v1017_v45 = vadd.f32 %v1012_v44, %v985_v52 }
0x1b2a   :  { %v1747_v47 = vadd.f32 0.001, %v1017_v45 }
0x1b2b   :  { %1135 = vrot.lane.b32.xlu0 %v1124_v28, %s1319_s15 }
0x1b8d   :  { %v893_v40 = vpop.permute.xlu0 %892 }
0x1b8e   :  { %v895_v42 = vmul.f32 %v893_v40, %v890_v38 }
0x1b90   :  { %v897_v43 = vadd.f32 %v896_v41, %v895_v42 }
0x1b92   :  { %902 = vrot.lane.b32.xlu1 %v897_v43, %s1318_s11 }
0x1b95   :  { %v1038_v46 = vpop.permute.xlu0 %1037 }
0x1b96   :  { %1294 = vrcp.f32 %v1038_v46  ;;  %v1073_v53 = vand.u32 2147483648, %v1038_v46  ;;  %v1071_v63 = vand.u32 2147483647, %v1038_v46  ;;  %vm1067_vm0 = vweird.f32 %v1038_v46 }
0x1b97   :  { %1296 = vlog2.f32 %v1020_v26 }
0x1b98   :  { %1298 = vrcp.f32 %v1036_v60  ;;  %v1074_v2 = vor.u32 1.1754944e-38, %v1073_v53  ;;  %vm1072_vm3 = vcmp.eq.f32.partialorder %v1071_v63, 8.507059e+37  ;;  %v91_v53 = vld [vmem:[%s1814_s1 + $0x10] sm:$0xff] }
0x1b9a   :  { %1039 = vrot.lane.b32.xlu1 %v1747_v47, %s1319_s15 }
0x1b9c   :  { %v1295_v48 = vpop.eup %1294 }
0x1b9d   :  { %v1297_v49 = vpop.eup %1296  ;;  %v1063_v50 = vmul.f32 %v1295_v48, %v1038_v46  ;;  %vm1068_vm15 = vweird.f32 %v1295_v48  ;;  %v1136_v56 = vpop.permute.xlu0 %1135 }
0x1b9e   :  { %v1126_v58 = vmul.f32 0.6931472, %v1297_v49  ;;  %vm1069_vm2 = vmor %vm1067_vm0, %vm1068_vm15  ;;  %v1299_v7 = vpop.eup %1298  ;;  %v1147_v24 = vsel %vm100_vm1, %v1136_v56, 0.0  ;;  %v1312_v49 = vld [vmem:[%s1803_s2 + $0x10] sm:$0xff]  ;;  %vm1169_vm0 = vcmp.eq.s32.totalorder %v1512_v55, 0 }
0x1b9f   :  { %v1064_v5 = vsub.f32 1.0, %v1063_v50  ;;  %v1048_v13 = vmul.f32 %v1299_v7, %v1036_v60  ;;  %vm1053_vm4 = vweird.f32 %v1299_v7  ;;  %v1025_v50 = vadd.f32 %v1312_v49, %v1741_v31 }
0x1ba0   :  { %vm1054_vm6 = vmor %vm1052_vm5, %vm1053_vm4 }
0x1ba1   :  { %v1065_v62 = vmul.f32 %v1295_v48, %v1064_v5  ;;  %v1049_v14 = vsub.f32 1.0, %v1048_v13  ;;  %v1029_v60 = vsub.f32 %v91_v53, %v1025_v50 }
0x1ba2   :  { %1137 = vrot.lane.b32.xlu1 %v1126_v58, %s1319_s15 }
0x1ba3   :  { %v1066_v0 = vadd.f32 %v1295_v48, %v1065_v62  ;;  %v1050_v15 = vmul.f32 %v1299_v7, %v1049_v14 }
0x1ba5   :  { %v1070_v4 = vsel %vm1069_vm2, %v1295_v48, %v1066_v0  ;;  %v1051_v16 = vadd.f32 %v1299_v7, %v1050_v15 }
0x1ba6   :  { %v1075_v6 = vsel %vm1072_vm3, %v1074_v2, %v1070_v4 }
0x1ba7   :  { %v1756_v11 = vmul.f32 %v1075_v6, %v1028_v3  ;;  %v1055_v10 = vsel %vm1054_vm6, %v1299_v7, %v1051_v16 }
0x1ba8   :  { %v1060_v12 = vsel %vm1057_vm7, %v1059_v18, %v1055_v10 }
0x1ba9   :  { %v1061_v20 = vmul.f32 %v1060_v12, %v1027_v19  ;;  %v1108_v63 = vmul.f32 %v1756_v11, %v1756_v11  ;;  %v1313_v11 = vld [vmem:[%s1803_s2 + $0x18] sm:$0xff] }
0x1bab   :  { %v1107_v21 = vmul.f32 %v1061_v20, %v1061_v20  ;;  %v1114_v0 = vsel %vm100_vm1, %v1108_v63, 0.0 }
0x1bad   :  { %v1111_v23 = vsel %vm100_vm1, %v1107_v21, 0.0 }
0x1bcc   :  { %1112 = vadd.xlane.f32.xlu1 %v1111_v23 }
0x1bd4   :  { %1148 = vadd.xlane.f32.xlu1 %v1147_v24 }
0x1c04   :  { %v903_v61 = vpop.permute.xlu1 %902 }
0x1c05   :  { %1212 = vmatmul.msk.f32.gmra.mxu0 %vm317_vm14, %v903_v61 }
0x1c0c   :  { %v1040_v42 = vpop.permute.xlu1 %1039 }
0x1c0d   :  { %vm1082_vm9 = vweird.f32 %v1040_v42  ;;  %v1086_v48 = vand.u32 2147483647, %v1040_v42 }
0x1c0f   :  { %vm1087_vm11 = vcmp.eq.f32.partialorder %v1086_v48, 8.507059e+37 }
0x1c14   :  { %v1138_v23 = vpop.permute.xlu1 %1137 }
0x1c15   :  { %v1150_v56 = vsel %vm100_vm1, %v1138_v23, 0.0 }
0x1c82   :  { %v932_v9 = vpop.f32.mrf.mxu0 }
0x1c83   :  { %v933_v57 = vadd.f32 %v1698_v22, %v932_v9 }
0x1c85   :  { %v938_v1 = vmax.f32 %v933_v57, 0.0  ;;  %v1113_v57 = vpop.xlane.xlu1 %1112 }
0x1c87   :  { %1216 = vmatmul.msk.f32.gmra.mxu2 %vm317_vm14, %v938_v1 }
0x1d0a   :  { %v980_v25 = vpop.f32.mrf.mxu2 }
0x1d0b   :  { %v981_v26 = vadd.f32 %v1725_v51, %v980_v25 }
0x1d0d   :  { %v990_v27 = vand.u32 2147483647, %v981_v26  ;;  %v986_v36 = vmax.f32 %v981_v26, 0.0  ;;  %v1026_v15 = vadd.f32 %v1313_v11, %v981_v26 }
0x1d0f   :  { %v994_v28 = vsub.f32 0.0, %v990_v27  ;;  %v1030_v8 = vsub.f32 %v92_v54, %v1026_v15 }
0x1d11   :  { %v1001_v29 = vmul.f32 1.442695, %v994_v28  ;;  %v1149_v28 = vpop.xlane.xlu1 %1148 }
0x1d13   :  { %1300 = vpow2.f32 %v1001_v29 }
0x1d19   :  { %v1301_v32 = vpop.eup %1300 }
0x1d1a   :  { %v1006_v34 = vadd.f32 1.0, %v1301_v32 }
0x1d1c   :  { %1302 = vlog2.f32 %v1006_v34 }
0x1d1d   :  { %1304 = vlog2.f32 %v1747_v47  ;;  %v1088_v47 = vand.u32 2147483648, %v1040_v42 }
0x1d1f   :  { %v1089_v58 = vor.u32 1.1754944e-38, %v1088_v47 }
0x1d22   :  { %v1303_v35 = vpop.eup %1302 }
0x1d23   :  { %v1014_v37 = vmul.f32 0.6931472, %v1303_v35  ;;  %v1305_v39 = vpop.eup %1304 }
0x1d24   :  { %v1128_v51 = vmul.f32 0.6931472, %v1305_v39 }
0x1d25   :  { %v1018_v38 = vadd.f32 %v1014_v37, %v986_v36 }
0x1d27   :  { %v1022_v22 = vadd.f32 0.001, %v1018_v38 }
0x1d29   :  { %1041 = vrot.lane.b32.xlu2 %v1022_v22, %s1319_s15  ;;  %1306 = vlog2.f32 %v1022_v22 }
0x1d2a   :  { %1308 = vrcp.f32 %v1040_v42 }
0x1d2f   :  { %v1307_v40 = vpop.eup %1306 }
0x1d30   :  { %v1130_v41 = vmul.f32 0.6931472, %v1307_v40  ;;  %v1309_v43 = vpop.eup %1308 }
0x1d31   :  { %1139 = vrot.lane.b32.xlu2 %v1128_v51, %s1319_s15  ;;  %v1078_v44 = vmul.f32 %v1309_v43, %v1040_v42  ;;  %vm1083_vm8 = vweird.f32 %v1309_v43 }
0x1d32   :  { %1141 = vrot.lane.b32.xlu0 %v1130_v41, %s1319_s15  ;;  %vm1084_vm10 = vmor %vm1082_vm9, %vm1083_vm8 }
0x1d33   :  { %v1079_v52 = vsub.f32 1.0, %v1078_v44 }
0x1d35   :  { %v1080_v45 = vmul.f32 %v1309_v43, %v1079_v52 }
0x1d37   :  { %v1081_v46 = vadd.f32 %v1309_v43, %v1080_v45 }
0x1d39   :  { %v1085_v5 = vsel %vm1084_vm10, %v1309_v43, %v1081_v46 }
0x1d3a   :  { %v1090_v59 = vsel %vm1087_vm11, %v1089_v58, %v1085_v5 }
0x1d3b   :  { %v1091_v62 = vmul.f32 %v1090_v59, %v1029_v60 }
0x1d3d   :  { %v1109_v30 = vmul.f32 %v1091_v62, %v1091_v62 }
0x1d3f   :  { %v1117_v2 = vsel %vm100_vm1, %v1109_v30, 0.0 }
0x1d5a   :  { %1115 = vadd.xlane.f32.xlu2 %v1114_v0 }
0x1d5c   :  { %1118 = vadd.xlane.f32.xlu0 %v1117_v2 }
0x1d83   :  { %v1042_v31 = vpop.permute.xlu2 %1041 }
0x1d84   :  { %1310 = vrcp.f32 %v1042_v31  ;;  %v1103_v14 = vand.u32 2147483648, %v1042_v31  ;;  %v1101_v17 = vand.u32 2147483647, %v1042_v31  ;;  %vm1097_vm13 = vweird.f32 %v1042_v31 }
0x1d86   :  { %v1104_v10 = vor.u32 1.1754944e-38, %v1103_v14  ;;  %vm1102_vm15 = vcmp.eq.f32.partialorder %v1101_v17, 8.507059e+37 }
0x1d8a   :  { %v1311_v3 = vpop.eup %1310 }
0x1d8b   :  { %v1093_v4 = vmul.f32 %v1311_v3, %v1042_v31  ;;  %v1140_v6 = vpop.permute.xlu2 %1139  ;;  %vm1098_vm12 = vweird.f32 %v1311_v3 }
0x1d8c   :  { %v1153_v7 = vsel %vm100_vm1, %v1140_v6, 0.0  ;;  %vm1099_vm14 = vmor %vm1097_vm13, %vm1098_vm12 }
0x1d8d   :  { %v1094_v13 = vsub.f32 1.0, %v1093_v4  ;;  %1154 = vadd.xlane.f32.xlu0 %v1153_v7 }
0x1d8f   :  { %v1095_v16 = vmul.f32 %v1311_v3, %v1094_v13 }
0x1d91   :  { %v1096_v33 = vadd.f32 %v1311_v3, %v1095_v16 }
0x1d93   :  { %v1100_v18 = vsel %vm1099_vm14, %v1311_v3, %v1096_v33 }
0x1d94   :  { %v1105_v12 = vsel %vm1102_vm15, %v1104_v10, %v1100_v18 }
0x1d95   :  { %v1106_v19 = vmul.f32 %v1105_v12, %v1030_v8 }
0x1d97   :  { %v1110_v20 = vmul.f32 %v1106_v19, %v1106_v19 }
0x1d99   :  { %v1120_v21 = vsel %vm100_vm1, %v1110_v20, 0.0 }
0x1d9a   :  { %1121 = vadd.xlane.f32.xlu2 %v1120_v21 }
0x1da2   :  { %1151 = vadd.xlane.f32.xlu2 %v1150_v56 }
0x1da4   :  { %v1142_v24 = vpop.permute.xlu0 %1141 }
0x1da5   :  { %v1156_v61 = vsel %vm100_vm1, %v1142_v24, 0.0 }
0x1da6   :  { %1157 = vadd.xlane.f32.xlu1 %v1156_v61 }
0x1dcd   :  { %v1116_v9 = vpop.xlane.xlu2 %1115 }
0x1dce   :  { %v1161_v1 = vadd.f32 %v1116_v9, %v1113_v57 }
0x1dcf   :  { %v1119_v25 = vpop.xlane.xlu0 %1118 }
0x1dd0   :  { %v1163_v27 = vadd.f32 %v1161_v1, %v1119_v25 }
0x1e00   :  { %v1155_v36 = vpop.xlane.xlu0 %1154 }
0x1e0d   :  { %v1122_v26 = vpop.xlane.xlu2 %1121 }
0x1e0e   :  { %v1165_v29 = vadd.f32 %v1163_v27, %v1122_v26 }
0x1e10   :  { %v1167_v34 = vmul.f32 -0.5, %v1165_v29 }
0x1e12   :  { %v1217_v22 = vadd.f32 -7.351508, %v1167_v34 }
0x1e15   :  { %v1152_v32 = vpop.xlane.xlu2 %1151 }
0x1e16   :  { %v1162_v35 = vadd.f32 %v1152_v32, %v1149_v28 }
0x1e18   :  { %v1164_v37 = vadd.f32 %v1162_v35, %v1155_v36 }
0x1e19   :  { %v1158_v38 = vpop.xlane.xlu1 %1157 }
0x1e1a   :  { %v1166_v39 = vadd.f32 %v1164_v37, %v1158_v38 }
0x1e1c   :  { %v1170_v40 = vsel %vm1169_vm0, %v1217_v22, %v1166_v39 }
0x1e1d   :  { %1171 = vst.msk [vmem:[%s1815_s16] sm:$0xff] %vm100_vm1, %v1170_v40 }

</bundles_post_ra>
